<compile_context>
chip_gen: v6e
topology: v6e:2x2x1
jax: 0.10.0
libtpu: 0.0.40
codegen_flags: <defaults>
</compile_context>

<pallas_src>
import numpy as np
import jax
import jax.numpy as jnp
from jax import lax
from jax.experimental import pallas as pl
from jax.experimental.pallas import tpu as pltpu

NUM_HEADS = 8
DIM_FF = 2048          # nn.TransformerEncoderLayer default dim_feedforward
LN_EPS = 1e-5
LEAKY_SLOPE = 0.01     # F.leaky_relu default
MASK_CONST = 1e30      # float32 branch of the PyTorch module
FF_CHUNK = 512         # FFN tiling chunk along the 2048-wide hidden dim

# rows of the packed small-vector array
(_V_BQKV, _V_BO, _V_G1, _V_BE1, _V_B1,
 _V_B2, _V_G2, _V_BE2, _V_WD, _V_BD) = range(10)
NUM_VEC = 10


def _layernorm(y, gamma, beta):
    mu = jnp.mean(y, axis=-1, keepdims=True)
    var = jnp.mean(jnp.square(y - mu), axis=-1, keepdims=True)
    return (y - mu) * lax.rsqrt(var + LN_EPS) * gamma + beta


def _mm(a, b):
    # (M,K) @ (K,N) -> f32 accumulation, single MXU pass (bf16 operands, default precision)
    return lax.dot_general(a, b, (((1,), (0,)), ((), ())),
                           preferred_element_type=jnp.float32)


def _mm_bt(a, b):
    # (M,K) x (N,K)^T -> (M,N) without materializing a transpose of b
    return lax.dot_general(a, b, (((1,), (1,)), ((), ())),
                           preferred_element_type=jnp.float32)


def _pooler_kernel(x_ref, pm_ref, wqkv_ref, wo_ref, w1_ref, w2_ref, vec_ref, out_ref):
    x = x_ref[0]                              # (S, H) f32 for the current batch element
    S, H = x.shape
    dH = H // NUM_HEADS
    Fdim = w1_ref.shape[1]

    # packed small vectors (f32)
    bqkv = vec_ref[_V_BQKV:_V_BQKV + 1, :3 * H]     # (1, 3H), q-part already scaled
    bo   = vec_ref[_V_BO:_V_BO + 1, :H]
    g1   = vec_ref[_V_G1:_V_G1 + 1, :H]
    be1  = vec_ref[_V_BE1:_V_BE1 + 1, :H]
    b2   = vec_ref[_V_B2:_V_B2 + 1, :H]
    g2   = vec_ref[_V_G2:_V_G2 + 1, :H]
    be2  = vec_ref[_V_BE2:_V_BE2 + 1, :H]
    wd   = vec_ref[_V_WD:_V_WD + 1, :H]
    bd   = vec_ref[_V_BD:_V_BD + 1, 0:1]

    # ---- fused QKV projection (q columns pre-scaled by 1/sqrt(dH) in the wrapper) ----
    x_bf = x.astype(jnp.bfloat16)
    qkv = _mm(x_bf, wqkv_ref[...]) + bqkv            # (S, 3H) f32

    # ---- per-head attention; output projection accumulated per head (no concat) ----
    attn = jnp.zeros((S, H), jnp.float32)
    for h in range(NUM_HEADS):
        qh = qkv[:, h * dH:(h + 1) * dH].astype(jnp.bfloat16)
        kh = qkv[:, H + h * dH:H + (h + 1) * dH].astype(jnp.bfloat16)
        vh = qkv[:, 2 * H + h * dH:2 * H + (h + 1) * dH].astype(jnp.bfloat16)
        s = _mm_bt(qh, kh)                           # (S, S) f32 scores (already scaled)
        s = s - jnp.max(s, axis=-1, keepdims=True)
        e = jnp.exp(s)
        p = e * pl.reciprocal(jnp.sum(e, axis=-1, keepdims=True), approx=True)
        pv = _mm(p.astype(jnp.bfloat16), vh)         # (S, dH) f32
        attn = attn + _mm(pv.astype(jnp.bfloat16), wo_ref[h])   # += pv @ Wo_h  -> (S, H)
    attn = attn + bo

    # ---- residual + LayerNorm1 (f32) ----
    y = _layernorm(x + attn, g1, be1)

    # ---- feed-forward (relu), tiled over the F dimension ----
    y_bf = y.astype(jnp.bfloat16)
    h2 = jnp.zeros((S, H), jnp.float32)
    for start in range(0, Fdim, FF_CHUNK):
        fc = min(FF_CHUNK, Fdim - start)
        h1c = _mm(y_bf, w1_ref[:, start:start + fc]) \
            + vec_ref[_V_B1:_V_B1 + 1, start:start + fc]        # (S, fc) f32
        h1c = jnp.maximum(h1c, 0.0)
        h2 = h2 + _mm(h1c.astype(jnp.bfloat16), w2_ref[start:start + fc, :])
    h2 = h2 + b2

    # ---- residual + LayerNorm2 + leaky_relu (f32) ----
    z = _layernorm(y + h2, g2, be2)
    z = jnp.where(z >= 0, z, LEAKY_SLOPE * z)

    # ---- dense_1 (H -> 1) as (1,H) x (S,H)^T -> lane-dense (1, S), then p_mask ----
    lg = _mm_bt(wd, z) + bd                          # (1, S) f32
    pm = pm_ref[0]                                   # (1, S)
    out_ref[0] = lg * (1.0 - pm) - MASK_CONST * pm


def init_params(key, hidden_size, dim_feedforward=DIM_FF):
    """Parameters in PyTorch layout (Linear weights are (out, in))."""
    H, F = hidden_size, dim_feedforward
    ks = jax.random.split(key, 12)
    std = 0.02
    n = lambda k, s: (jax.random.normal(k, s, jnp.float32) * std)
    return dict(
        wqkv=n(ks[0], (3 * H, H)), bqkv=n(ks[1], (1, 3 * H)),
        wo=n(ks[2], (H, H)),       bo=n(ks[3], (1, H)),
        g1=jnp.ones((1, H), jnp.float32), be1=jnp.zeros((1, H), jnp.float32),
        w1=n(ks[4], (F, H)),       b1=n(ks[5], (1, F)),
        w2=n(ks[6], (H, F)),       b2=n(ks[7], (1, H)),
        g2=jnp.ones((1, H), jnp.float32), be2=jnp.zeros((1, H), jnp.float32),
        wd=n(ks[8], (1, H)),       bd=n(ks[9], (1, 1)),
    )


def _prepare_kernel_params(params):
    """PyTorch-layout params -> kernel-layout arrays: pre-transposed, q-scale folded,
    bf16 weights, and all small vectors packed into one (NUM_VEC, Lmax) f32 array."""
    wqkv = params["wqkv"].astype(jnp.float32)         # (3H, H)
    H = wqkv.shape[1]
    F = params["w1"].shape[0]
    dH = H // NUM_HEADS
    scale = 1.0 / float(np.sqrt(dH))

    wqkv_t = wqkv.T                                   # (H, 3H) = W_qkv^T
    wqkv_t = wqkv_t.at[:, :H].multiply(scale)         # fold 1/sqrt(dH) into q projection
    bqkv = params["bqkv"].astype(jnp.float32)
    bqkv = bqkv.at[:, :H].multiply(scale)

    wo_heads = params["wo"].astype(jnp.float32).T.reshape(NUM_HEADS, dH, H)
    w1_t = params["w1"].astype(jnp.float32).T          # (H, F)
    w2_t = params["w2"].astype(jnp.float32).T          # (F, H)

    Lmax = max(3 * H, F)

    def row(v):
        v = jnp.asarray(v, jnp.float32).reshape(1, -1)
        return jnp.pad(v, ((0, 0), (0, Lmax - v.shape[1])))

    vecs = jnp.concatenate([
        row(bqkv), row(params["bo"]), row(params["g1"]), row(params["be1"]),
        row(params["b1"]), row(params["b2"]), row(params["g2"]), row(params["be2"]),
        row(params["wd"]), row(params["bd"]),
    ], axis=0)                                         # (NUM_VEC, Lmax) f32

    return dict(
        wqkv_t=wqkv_t.astype(jnp.bfloat16),
        wo_heads=wo_heads.astype(jnp.bfloat16),
        w1_t=w1_t.astype(jnp.bfloat16),
        w2_t=w2_t.astype(jnp.bfloat16),
        vecs=vecs,
    )


def pooler_start_logits(hidden_states, params, p_mask=None):
    x = hidden_states.astype(jnp.float32)
    B, S, H = x.shape
    if p_mask is None:
        p_mask = jnp.zeros((B, S), jnp.float32)
    pm3 = p_mask.astype(jnp.float32).reshape(B, 1, S)

    kp = _prepare_kernel_params(params)
    wqkv_t, wo_heads = kp["wqkv_t"], kp["wo_heads"]
    w1_t, w2_t, vecs = kp["w1_t"], kp["w2_t"], kp["vecs"]

    in_specs = [
        pl.BlockSpec((1, S, H), lambda b: (b, 0, 0)),          # hidden_states tile
        pl.BlockSpec((1, 1, S), lambda b: (b, 0, 0)),          # p_mask tile
        pl.BlockSpec(wqkv_t.shape, lambda b: (0, 0)),          # grid-invariant weights
        pl.BlockSpec(wo_heads.shape, lambda b: (0, 0, 0)),
        pl.BlockSpec(w1_t.shape, lambda b: (0, 0)),
        pl.BlockSpec(w2_t.shape, lambda b: (0, 0)),
        pl.BlockSpec(vecs.shape, lambda b: (0, 0)),            # packed bias/LN/dense_1 vectors
    ]

    out = pl.pallas_call(
        _pooler_kernel,
        out_shape=jax.ShapeDtypeStruct((B, 1, S), jnp.float32),
        grid=(B,),
        in_specs=in_specs,
        out_specs=pl.BlockSpec((1, 1, S), lambda b: (b, 0, 0)),
        compiler_params=pltpu.CompilerParams(
            dimension_semantics=("parallel",)),                # independent batch elements
    )(x, pm3, wqkv_t, wo_heads, w1_t, w2_t, vecs)
    return out.reshape(B, S)


def pooler_start_logits_ref(hidden_states, params, p_mask=None):
    """Pure-JAX reference mirroring the PyTorch forward (eval mode), full f32."""
    HI = lax.Precision.HIGHEST
    x = hidden_states.astype(jnp.float32)
    B, S, H = x.shape
    dH = H // NUM_HEADS
    qkv = jnp.einsum("bsh,kh->bsk", x, params["wqkv"], precision=HI) + params["bqkv"][0]
    q = qkv[..., :H].reshape(B, S, NUM_HEADS, dH)
    k = qkv[..., H:2 * H].reshape(B, S, NUM_HEADS, dH)
    v = qkv[..., 2 * H:].reshape(B, S, NUM_HEADS, dH)
    s = jnp.einsum("bqnd,bknd->bnqk", q, k, precision=HI) / np.sqrt(dH)
    p = jax.nn.softmax(s, axis=-1)
    a = jnp.einsum("bnqk,bknd->bqnd", p, v, precision=HI).reshape(B, S, H)
    a = jnp.einsum("bsh,oh->bso", a, params["wo"], precision=HI) + params["bo"][0]
    y = _layernorm(x + a, params["g1"][0], params["be1"][0])
    h1 = jnp.maximum(jnp.einsum("bsh,fh->bsf", y, params["w1"], precision=HI) + params["b1"][0], 0.0)
    h2 = jnp.einsum("bsf,hf->bsh", h1, params["w2"], precision=HI) + params["b2"][0]
    z = _layernorm(y + h2, params["g2"][0], params["be2"][0])
    z = jnp.where(z >= 0, z, LEAKY_SLOPE * z)
    logits = jnp.einsum("bsh,oh->bso", z, params["wd"], precision=HI)[..., 0] + params["bd"][0, 0]
    if p_mask is not None:
        pm = p_mask.astype(jnp.float32)
        logits = logits * (1.0 - pm) - MASK_CONST * pm
    return logits


if __name__ == "__main__":
    key = jax.random.PRNGKey(0)
    kx, kp, km = jax.random.split(key, 3)
    B, S, H = 2, 8, 32                       # batch, seq, hidden (hidden divisible by nhead=8)
    params = init_params(kp, H)
    hidden_states = jax.random.normal(kx, (B, S, H), jnp.float32)
    p_mask = (jax.random.uniform(km, (B, S)) < 0.25).astype(jnp.float32)

    out = pooler_start_logits(hidden_states, params, p_mask)
    out = jax.block_until_ready(out)

    ref = pooler_start_logits_ref(hidden_states, params, p_mask)
    # bf16 single-pass MXU matmuls vs. f32 HIGHEST reference -> ~1e-3 level agreement,
    # comfortably within the 1e-2 tolerance.
    np.testing.assert_allclose(np.asarray(out), np.asarray(ref), rtol=1e-2, atol=1e-2)
    print("KERNEL_OK")
</pallas_src>

<mosaic_0001>
module attributes {stable_mosaic.version = 11 : i64} {
  func.func @_pooler_kernel(%arg0: i32, %arg1: memref<1x8x32xf32, #tpu.memory_space<vmem>>, %arg2: memref<1x1x8xf32, #tpu.memory_space<vmem>>, %arg3: memref<32x96xbf16, #tpu.memory_space<vmem>>, %arg4: memref<8x4x32xbf16, #tpu.memory_space<vmem>>, %arg5: memref<32x2048xbf16, #tpu.memory_space<vmem>>, %arg6: memref<2048x32xbf16, #tpu.memory_space<vmem>>, %arg7: memref<10x2048xf32, #tpu.memory_space<vmem>>, %arg8: memref<1x1x8xf32, #tpu.memory_space<vmem>>) attributes {dimension_semantics = [#tpu.dimension_semantics<parallel>], iteration_bounds = array<i64: 2>, scalar_prefetch = 0 : i64, scratch_operands = 0 : i64, tpu.core_type = #tpu.core_type<tc>, window_params = [{transform_indices = @transform_0, window_bounds = array<i64: 1, 8, 32>}, {transform_indices = @transform_1, window_bounds = array<i64: 1, 1, 8>}, {pipeline_mode = #tpu.pipeline_mode<synchronous>, transform_indices = @transform_2, window_bounds = array<i64: 32, 96>}, {pipeline_mode = #tpu.pipeline_mode<synchronous>, transform_indices = @transform_3, window_bounds = array<i64: 8, 4, 32>}, {pipeline_mode = #tpu.pipeline_mode<synchronous>, transform_indices = @transform_4, window_bounds = array<i64: 32, 2048>}, {pipeline_mode = #tpu.pipeline_mode<synchronous>, transform_indices = @transform_5, window_bounds = array<i64: 2048, 32>}, {pipeline_mode = #tpu.pipeline_mode<synchronous>, transform_indices = @transform_6, window_bounds = array<i64: 10, 2048>}, {transform_indices = @transform_7, window_bounds = array<i64: 1, 1, 8>}]} {
    %c0 = arith.constant 0 : index
    %c0_0 = arith.constant 0 : index
    %c0_1 = arith.constant 0 : index
    %0 = vector.load %arg1[%c0, %c0_0, %c0_1] : memref<1x8x32xf32, #tpu.memory_space<vmem>>, vector<1x8x32xf32>
    %1 = vector.shape_cast %0 : vector<1x8x32xf32> to vector<8x32xf32>
    %c0_2 = arith.constant 0 : index
    %c0_3 = arith.constant 0 : index
    %2 = vector.load %arg7[%c0_2, %c0_3] : memref<10x2048xf32, #tpu.memory_space<vmem>>, vector<1x96xf32>
    %c1 = arith.constant 1 : index
    %c0_4 = arith.constant 0 : index
    %3 = vector.load %arg7[%c1, %c0_4] : memref<10x2048xf32, #tpu.memory_space<vmem>>, vector<1x32xf32>
    %c2 = arith.constant 2 : index
    %c0_5 = arith.constant 0 : index
    %4 = vector.load %arg7[%c2, %c0_5] : memref<10x2048xf32, #tpu.memory_space<vmem>>, vector<1x32xf32>
    %c3 = arith.constant 3 : index
    %c0_6 = arith.constant 0 : index
    %5 = vector.load %arg7[%c3, %c0_6] : memref<10x2048xf32, #tpu.memory_space<vmem>>, vector<1x32xf32>
    %c5 = arith.constant 5 : index
    %c0_7 = arith.constant 0 : index
    %6 = vector.load %arg7[%c5, %c0_7] : memref<10x2048xf32, #tpu.memory_space<vmem>>, vector<1x32xf32>
    %c6 = arith.constant 6 : index
    %c0_8 = arith.constant 0 : index
    %7 = vector.load %arg7[%c6, %c0_8] : memref<10x2048xf32, #tpu.memory_space<vmem>>, vector<1x32xf32>
    %c7 = arith.constant 7 : index
    %c0_9 = arith.constant 0 : index
    %8 = vector.load %arg7[%c7, %c0_9] : memref<10x2048xf32, #tpu.memory_space<vmem>>, vector<1x32xf32>
    %c8 = arith.constant 8 : index
    %c0_10 = arith.constant 0 : index
    %9 = vector.load %arg7[%c8, %c0_10] : memref<10x2048xf32, #tpu.memory_space<vmem>>, vector<1x32xf32>
    %c9 = arith.constant 9 : index
    %c0_11 = arith.constant 0 : index
    %10 = vector.load %arg7[%c9, %c0_11] : memref<10x2048xf32, #tpu.memory_space<vmem>>, vector<1x1xf32>
    %11 = arith.truncf %1 : vector<8x32xf32> to vector<8x32xbf16>
    %c0_12 = arith.constant 0 : index
    %c0_13 = arith.constant 0 : index
    %12 = vector.load %arg3[%c0_12, %c0_13] : memref<32x96xbf16, #tpu.memory_space<vmem>>, vector<32x96xbf16>
    %cst = arith.constant dense<0.000000e+00> : vector<8x96xf32>
    %13 = tpu.matmul %11, %12, %cst {dimension_numbers = #tpu.dot_dimension_numbers<[1], [0], [0], [1], [0, 0, 1, 1], [], []>} : vector<8x32xbf16>, vector<32x96xbf16>, vector<8x96xf32> -> vector<8x96xf32>
    %14 = vector.broadcast %2 : vector<1x96xf32> to vector<8x96xf32>
    %15 = arith.addf %13, %14 : vector<8x96xf32>
    %cst_14 = arith.constant 0.000000e+00 : f32
    %16 = vector.broadcast %cst_14 : f32 to vector<8x32xf32>
    %17 = vector.extract_strided_slice %15 {offsets = [0, 0], sizes = [8, 4], strides = [1, 1]} : vector<8x96xf32> to vector<8x4xf32>
    %18 = arith.truncf %17 : vector<8x4xf32> to vector<8x4xbf16>
    %19 = vector.extract_strided_slice %15 {offsets = [0, 32], sizes = [8, 4], strides = [1, 1]} : vector<8x96xf32> to vector<8x4xf32>
    %20 = arith.truncf %19 : vector<8x4xf32> to vector<8x4xbf16>
    %21 = vector.extract_strided_slice %15 {offsets = [0, 64], sizes = [8, 4], strides = [1, 1]} : vector<8x96xf32> to vector<8x4xf32>
    %22 = arith.truncf %21 : vector<8x4xf32> to vector<8x4xbf16>
    %cst_15 = arith.constant dense<0.000000e+00> : vector<8x8xf32>
    %23 = tpu.matmul %18, %20, %cst_15 {dimension_numbers = #tpu.dot_dimension_numbers<[1], [1], [0], [0], [0, 0, 1, 0], [], []>} : vector<8x4xbf16>, vector<8x4xbf16>, vector<8x8xf32> -> vector<8x8xf32>
    %cst_16 = arith.constant dense<0xFF800000> : vector<8xf32>
    %24 = vector.multi_reduction <maximumf>, %23, %cst_16 [1] : vector<8x8xf32> to vector<8xf32>
    %25 = vector.shape_cast %24 : vector<8xf32> to vector<8x1xf32>
    %26 = vector.broadcast %25 : vector<8x1xf32> to vector<8x8xf32>
    %27 = arith.subf %23, %26 : vector<8x8xf32>
    %28 = math.exp %27 : vector<8x8xf32>
    %cst_17 = arith.constant dense<0.000000e+00> : vector<8xf32>
    %29 = vector.multi_reduction <add>, %28, %cst_17 [1] : vector<8x8xf32> to vector<8xf32>
    %30 = vector.shape_cast %29 : vector<8xf32> to vector<8x1xf32>
    %31 = tpu.reciprocal %30 {approx = true} : vector<8x1xf32> -> vector<8x1xf32>
    %32 = vector.broadcast %31 : vector<8x1xf32> to vector<8x8xf32>
    %33 = arith.mulf %28, %32 : vector<8x8xf32>
    %34 = arith.truncf %33 : vector<8x8xf32> to vector<8x8xbf16>
    %cst_18 = arith.constant dense<0.000000e+00> : vector<8x4xf32>
    %35 = tpu.matmul %34, %22, %cst_18 {dimension_numbers = #tpu.dot_dimension_numbers<[1], [0], [0], [1], [0, 0, 1, 1], [], []>} : vector<8x8xbf16>, vector<8x4xbf16>, vector<8x4xf32> -> vector<8x4xf32>
    %36 = arith.truncf %35 : vector<8x4xf32> to vector<8x4xbf16>
    %c0_19 = arith.constant 0 : index
    %c0_20 = arith.constant 0 : index
    %c0_21 = arith.constant 0 : index
    %37 = vector.load %arg4[%c0_19, %c0_20, %c0_21] : memref<8x4x32xbf16, #tpu.memory_space<vmem>>, vector<1x4x32xbf16>
    %38 = vector.shape_cast %37 : vector<1x4x32xbf16> to vector<4x32xbf16>
    %cst_22 = arith.constant dense<0.000000e+00> : vector<8x32xf32>
    %39 = tpu.matmul %36, %38, %cst_22 {dimension_numbers = #tpu.dot_dimension_numbers<[1], [0], [0], [1], [0, 0, 1, 1], [], []>} : vector<8x4xbf16>, vector<4x32xbf16>, vector<8x32xf32> -> vector<8x32xf32>
    %40 = arith.addf %16, %39 : vector<8x32xf32>
    %41 = vector.extract_strided_slice %15 {offsets = [0, 4], sizes = [8, 4], strides = [1, 1]} : vector<8x96xf32> to vector<8x4xf32>
    %42 = arith.truncf %41 : vector<8x4xf32> to vector<8x4xbf16>
    %43 = vector.extract_strided_slice %15 {offsets = [0, 36], sizes = [8, 4], strides = [1, 1]} : vector<8x96xf32> to vector<8x4xf32>
    %44 = arith.truncf %43 : vector<8x4xf32> to vector<8x4xbf16>
    %45 = vector.extract_strided_slice %15 {offsets = [0, 68], sizes = [8, 4], strides = [1, 1]} : vector<8x96xf32> to vector<8x4xf32>
    %46 = arith.truncf %45 : vector<8x4xf32> to vector<8x4xbf16>
    %cst_23 = arith.constant dense<0.000000e+00> : vector<8x8xf32>
    %47 = tpu.matmul %42, %44, %cst_23 {dimension_numbers = #tpu.dot_dimension_numbers<[1], [1], [0], [0], [0, 0, 1, 0], [], []>} : vector<8x4xbf16>, vector<8x4xbf16>, vector<8x8xf32> -> vector<8x8xf32>
    %cst_24 = arith.constant dense<0xFF800000> : vector<8xf32>
    %48 = vector.multi_reduction <maximumf>, %47, %cst_24 [1] : vector<8x8xf32> to vector<8xf32>
    %49 = vector.shape_cast %48 : vector<8xf32> to vector<8x1xf32>
    %50 = vector.broadcast %49 : vector<8x1xf32> to vector<8x8xf32>
    %51 = arith.subf %47, %50 : vector<8x8xf32>
    %52 = math.exp %51 : vector<8x8xf32>
    %cst_25 = arith.constant dense<0.000000e+00> : vector<8xf32>
    %53 = vector.multi_reduction <add>, %52, %cst_25 [1] : vector<8x8xf32> to vector<8xf32>
    %54 = vector.shape_cast %53 : vector<8xf32> to vector<8x1xf32>
    %55 = tpu.reciprocal %54 {approx = true} : vector<8x1xf32> -> vector<8x1xf32>
    %56 = vector.broadcast %55 : vector<8x1xf32> to vector<8x8xf32>
    %57 = arith.mulf %52, %56 : vector<8x8xf32>
    %58 = arith.truncf %57 : vector<8x8xf32> to vector<8x8xbf16>
    %cst_26 = arith.constant dense<0.000000e+00> : vector<8x4xf32>
    %59 = tpu.matmul %58, %46, %cst_26 {dimension_numbers = #tpu.dot_dimension_numbers<[1], [0], [0], [1], [0, 0, 1, 1], [], []>} : vector<8x8xbf16>, vector<8x4xbf16>, vector<8x4xf32> -> vector<8x4xf32>
    %60 = arith.truncf %59 : vector<8x4xf32> to vector<8x4xbf16>
    %c1_27 = arith.constant 1 : index
    %c0_28 = arith.constant 0 : index
    %c0_29 = arith.constant 0 : index
    %61 = vector.load %arg4[%c1_27, %c0_28, %c0_29] : memref<8x4x32xbf16, #tpu.memory_space<vmem>>, vector<1x4x32xbf16>
    %62 = vector.shape_cast %61 : vector<1x4x32xbf16> to vector<4x32xbf16>
    %cst_30 = arith.constant dense<0.000000e+00> : vector<8x32xf32>
    %63 = tpu.matmul %60, %62, %cst_30 {dimension_numbers = #tpu.dot_dimension_numbers<[1], [0], [0], [1], [0, 0, 1, 1], [], []>} : vector<8x4xbf16>, vector<4x32xbf16>, vector<8x32xf32> -> vector<8x32xf32>
    %64 = arith.addf %40, %63 : vector<8x32xf32>
    %65 = vector.extract_strided_slice %15 {offsets = [0, 8], sizes = [8, 4], strides = [1, 1]} : vector<8x96xf32> to vector<8x4xf32>
    %66 = arith.truncf %65 : vector<8x4xf32> to vector<8x4xbf16>
    %67 = vector.extract_strided_slice %15 {offsets = [0, 40], sizes = [8, 4], strides = [1, 1]} : vector<8x96xf32> to vector<8x4xf32>
    %68 = arith.truncf %67 : vector<8x4xf32> to vector<8x4xbf16>
    %69 = vector.extract_strided_slice %15 {offsets = [0, 72], sizes = [8, 4], strides = [1, 1]} : vector<8x96xf32> to vector<8x4xf32>
    %70 = arith.truncf %69 : vector<8x4xf32> to vector<8x4xbf16>
    %cst_31 = arith.constant dense<0.000000e+00> : vector<8x8xf32>
    %71 = tpu.matmul %66, %68, %cst_31 {dimension_numbers = #tpu.dot_dimension_numbers<[1], [1], [0], [0], [0, 0, 1, 0], [], []>} : vector<8x4xbf16>, vector<8x4xbf16>, vector<8x8xf32> -> vector<8x8xf32>
    %cst_32 = arith.constant dense<0xFF800000> : vector<8xf32>
    %72 = vector.multi_reduction <maximumf>, %71, %cst_32 [1] : vector<8x8xf32> to vector<8xf32>
    %73 = vector.shape_cast %72 : vector<8xf32> to vector<8x1xf32>
    %74 = vector.broadcast %73 : vector<8x1xf32> to vector<8x8xf32>
    %75 = arith.subf %71, %74 : vector<8x8xf32>
    %76 = math.exp %75 : vector<8x8xf32>
    %cst_33 = arith.constant dense<0.000000e+00> : vector<8xf32>
    %77 = vector.multi_reduction <add>, %76, %cst_33 [1] : vector<8x8xf32> to vector<8xf32>
    %78 = vector.shape_cast %77 : vector<8xf32> to vector<8x1xf32>
    %79 = tpu.reciprocal %78 {approx = true} : vector<8x1xf32> -> vector<8x1xf32>
    %80 = vector.broadcast %79 : vector<8x1xf32> to vector<8x8xf32>
    %81 = arith.mulf %76, %80 : vector<8x8xf32>
    %82 = arith.truncf %81 : vector<8x8xf32> to vector<8x8xbf16>
    %cst_34 = arith.constant dense<0.000000e+00> : vector<8x4xf32>
    %83 = tpu.matmul %82, %70, %cst_34 {dimension_numbers = #tpu.dot_dimension_numbers<[1], [0], [0], [1], [0, 0, 1, 1], [], []>} : vector<8x8xbf16>, vector<8x4xbf16>, vector<8x4xf32> -> vector<8x4xf32>
    %84 = arith.truncf %83 : vector<8x4xf32> to vector<8x4xbf16>
    %c2_35 = arith.constant 2 : index
    %c0_36 = arith.constant 0 : index
    %c0_37 = arith.constant 0 : index
    %85 = vector.load %arg4[%c2_35, %c0_36, %c0_37] : memref<8x4x32xbf16, #tpu.memory_space<vmem>>, vector<1x4x32xbf16>
    %86 = vector.shape_cast %85 : vector<1x4x32xbf16> to vector<4x32xbf16>
    %cst_38 = arith.constant dense<0.000000e+00> : vector<8x32xf32>
    %87 = tpu.matmul %84, %86, %cst_38 {dimension_numbers = #tpu.dot_dimension_numbers<[1], [0], [0], [1], [0, 0, 1, 1], [], []>} : vector<8x4xbf16>, vector<4x32xbf16>, vector<8x32xf32> -> vector<8x32xf32>
    %88 = arith.addf %64, %87 : vector<8x32xf32>
    %89 = vector.extract_strided_slice %15 {offsets = [0, 12], sizes = [8, 4], strides = [1, 1]} : vector<8x96xf32> to vector<8x4xf32>
    %90 = arith.truncf %89 : vector<8x4xf32> to vector<8x4xbf16>
    %91 = vector.extract_strided_slice %15 {offsets = [0, 44], sizes = [8, 4], strides = [1, 1]} : vector<8x96xf32> to vector<8x4xf32>
    %92 = arith.truncf %91 : vector<8x4xf32> to vector<8x4xbf16>
    %93 = vector.extract_strided_slice %15 {offsets = [0, 76], sizes = [8, 4], strides = [1, 1]} : vector<8x96xf32> to vector<8x4xf32>
    %94 = arith.truncf %93 : vector<8x4xf32> to vector<8x4xbf16>
    %cst_39 = arith.constant dense<0.000000e+00> : vector<8x8xf32>
    %95 = tpu.matmul %90, %92, %cst_39 {dimension_numbers = #tpu.dot_dimension_numbers<[1], [1], [0], [0], [0, 0, 1, 0], [], []>} : vector<8x4xbf16>, vector<8x4xbf16>, vector<8x8xf32> -> vector<8x8xf32>
    %cst_40 = arith.constant dense<0xFF800000> : vector<8xf32>
    %96 = vector.multi_reduction <maximumf>, %95, %cst_40 [1] : vector<8x8xf32> to vector<8xf32>
    %97 = vector.shape_cast %96 : vector<8xf32> to vector<8x1xf32>
    %98 = vector.broadcast %97 : vector<8x1xf32> to vector<8x8xf32>
    %99 = arith.subf %95, %98 : vector<8x8xf32>
    %100 = math.exp %99 : vector<8x8xf32>
    %cst_41 = arith.constant dense<0.000000e+00> : vector<8xf32>
    %101 = vector.multi_reduction <add>, %100, %cst_41 [1] : vector<8x8xf32> to vector<8xf32>
    %102 = vector.shape_cast %101 : vector<8xf32> to vector<8x1xf32>
    %103 = tpu.reciprocal %102 {approx = true} : vector<8x1xf32> -> vector<8x1xf32>
    %104 = vector.broadcast %103 : vector<8x1xf32> to vector<8x8xf32>
    %105 = arith.mulf %100, %104 : vector<8x8xf32>
    %106 = arith.truncf %105 : vector<8x8xf32> to vector<8x8xbf16>
    %cst_42 = arith.constant dense<0.000000e+00> : vector<8x4xf32>
    %107 = tpu.matmul %106, %94, %cst_42 {dimension_numbers = #tpu.dot_dimension_numbers<[1], [0], [0], [1], [0, 0, 1, 1], [], []>} : vector<8x8xbf16>, vector<8x4xbf16>, vector<8x4xf32> -> vector<8x4xf32>
    %108 = arith.truncf %107 : vector<8x4xf32> to vector<8x4xbf16>
    %c3_43 = arith.constant 3 : index
    %c0_44 = arith.constant 0 : index
    %c0_45 = arith.constant 0 : index
    %109 = vector.load %arg4[%c3_43, %c0_44, %c0_45] : memref<8x4x32xbf16, #tpu.memory_space<vmem>>, vector<1x4x32xbf16>
    %110 = vector.shape_cast %109 : vector<1x4x32xbf16> to vector<4x32xbf16>
    %cst_46 = arith.constant dense<0.000000e+00> : vector<8x32xf32>
    %111 = tpu.matmul %108, %110, %cst_46 {dimension_numbers = #tpu.dot_dimension_numbers<[1], [0], [0], [1], [0, 0, 1, 1], [], []>} : vector<8x4xbf16>, vector<4x32xbf16>, vector<8x32xf32> -> vector<8x32xf32>
    %112 = arith.addf %88, %111 : vector<8x32xf32>
    %113 = vector.extract_strided_slice %15 {offsets = [0, 16], sizes = [8, 4], strides = [1, 1]} : vector<8x96xf32> to vector<8x4xf32>
    %114 = arith.truncf %113 : vector<8x4xf32> to vector<8x4xbf16>
    %115 = vector.extract_strided_slice %15 {offsets = [0, 48], sizes = [8, 4], strides = [1, 1]} : vector<8x96xf32> to vector<8x4xf32>
    %116 = arith.truncf %115 : vector<8x4xf32> to vector<8x4xbf16>
    %117 = vector.extract_strided_slice %15 {offsets = [0, 80], sizes = [8, 4], strides = [1, 1]} : vector<8x96xf32> to vector<8x4xf32>
    %118 = arith.truncf %117 : vector<8x4xf32> to vector<8x4xbf16>
    %cst_47 = arith.constant dense<0.000000e+00> : vector<8x8xf32>
    %119 = tpu.matmul %114, %116, %cst_47 {dimension_numbers = #tpu.dot_dimension_numbers<[1], [1], [0], [0], [0, 0, 1, 0], [], []>} : vector<8x4xbf16>, vector<8x4xbf16>, vector<8x8xf32> -> vector<8x8xf32>
    %cst_48 = arith.constant dense<0xFF800000> : vector<8xf32>
    %120 = vector.multi_reduction <maximumf>, %119, %cst_48 [1] : vector<8x8xf32> to vector<8xf32>
    %121 = vector.shape_cast %120 : vector<8xf32> to vector<8x1xf32>
    %122 = vector.broadcast %121 : vector<8x1xf32> to vector<8x8xf32>
    %123 = arith.subf %119, %122 : vector<8x8xf32>
    %124 = math.exp %123 : vector<8x8xf32>
    %cst_49 = arith.constant dense<0.000000e+00> : vector<8xf32>
    %125 = vector.multi_reduction <add>, %124, %cst_49 [1] : vector<8x8xf32> to vector<8xf32>
    %126 = vector.shape_cast %125 : vector<8xf32> to vector<8x1xf32>
    %127 = tpu.reciprocal %126 {approx = true} : vector<8x1xf32> -> vector<8x1xf32>
    %128 = vector.broadcast %127 : vector<8x1xf32> to vector<8x8xf32>
    %129 = arith.mulf %124, %128 : vector<8x8xf32>
    %130 = arith.truncf %129 : vector<8x8xf32> to vector<8x8xbf16>
    %cst_50 = arith.constant dense<0.000000e+00> : vector<8x4xf32>
    %131 = tpu.matmul %130, %118, %cst_50 {dimension_numbers = #tpu.dot_dimension_numbers<[1], [0], [0], [1], [0, 0, 1, 1], [], []>} : vector<8x8xbf16>, vector<8x4xbf16>, vector<8x4xf32> -> vector<8x4xf32>
    %132 = arith.truncf %131 : vector<8x4xf32> to vector<8x4xbf16>
    %c4 = arith.constant 4 : index
    %c0_51 = arith.constant 0 : index
    %c0_52 = arith.constant 0 : index
    %133 = vector.load %arg4[%c4, %c0_51, %c0_52] : memref<8x4x32xbf16, #tpu.memory_space<vmem>>, vector<1x4x32xbf16>
    %134 = vector.shape_cast %133 : vector<1x4x32xbf16> to vector<4x32xbf16>
    %cst_53 = arith.constant dense<0.000000e+00> : vector<8x32xf32>
    %135 = tpu.matmul %132, %134, %cst_53 {dimension_numbers = #tpu.dot_dimension_numbers<[1], [0], [0], [1], [0, 0, 1, 1], [], []>} : vector<8x4xbf16>, vector<4x32xbf16>, vector<8x32xf32> -> vector<8x32xf32>
    %136 = arith.addf %112, %135 : vector<8x32xf32>
    %137 = vector.extract_strided_slice %15 {offsets = [0, 20], sizes = [8, 4], strides = [1, 1]} : vector<8x96xf32> to vector<8x4xf32>
    %138 = arith.truncf %137 : vector<8x4xf32> to vector<8x4xbf16>
    %139 = vector.extract_strided_slice %15 {offsets = [0, 52], sizes = [8, 4], strides = [1, 1]} : vector<8x96xf32> to vector<8x4xf32>
    %140 = arith.truncf %139 : vector<8x4xf32> to vector<8x4xbf16>
    %141 = vector.extract_strided_slice %15 {offsets = [0, 84], sizes = [8, 4], strides = [1, 1]} : vector<8x96xf32> to vector<8x4xf32>
    %142 = arith.truncf %141 : vector<8x4xf32> to vector<8x4xbf16>
    %cst_54 = arith.constant dense<0.000000e+00> : vector<8x8xf32>
    %143 = tpu.matmul %138, %140, %cst_54 {dimension_numbers = #tpu.dot_dimension_numbers<[1], [1], [0], [0], [0, 0, 1, 0], [], []>} : vector<8x4xbf16>, vector<8x4xbf16>, vector<8x8xf32> -> vector<8x8xf32>
    %cst_55 = arith.constant dense<0xFF800000> : vector<8xf32>
    %144 = vector.multi_reduction <maximumf>, %143, %cst_55 [1] : vector<8x8xf32> to vector<8xf32>
    %145 = vector.shape_cast %144 : vector<8xf32> to vector<8x1xf32>
    %146 = vector.broadcast %145 : vector<8x1xf32> to vector<8x8xf32>
    %147 = arith.subf %143, %146 : vector<8x8xf32>
    %148 = math.exp %147 : vector<8x8xf32>
    %cst_56 = arith.constant dense<0.000000e+00> : vector<8xf32>
    %149 = vector.multi_reduction <add>, %148, %cst_56 [1] : vector<8x8xf32> to vector<8xf32>
    %150 = vector.shape_cast %149 : vector<8xf32> to vector<8x1xf32>
    %151 = tpu.reciprocal %150 {approx = true} : vector<8x1xf32> -> vector<8x1xf32>
    %152 = vector.broadcast %151 : vector<8x1xf32> to vector<8x8xf32>
    %153 = arith.mulf %148, %152 : vector<8x8xf32>
    %154 = arith.truncf %153 : vector<8x8xf32> to vector<8x8xbf16>
    %cst_57 = arith.constant dense<0.000000e+00> : vector<8x4xf32>
    %155 = tpu.matmul %154, %142, %cst_57 {dimension_numbers = #tpu.dot_dimension_numbers<[1], [0], [0], [1], [0, 0, 1, 1], [], []>} : vector<8x8xbf16>, vector<8x4xbf16>, vector<8x4xf32> -> vector<8x4xf32>
    %156 = arith.truncf %155 : vector<8x4xf32> to vector<8x4xbf16>
    %c5_58 = arith.constant 5 : index
    %c0_59 = arith.constant 0 : index
    %c0_60 = arith.constant 0 : index
    %157 = vector.load %arg4[%c5_58, %c0_59, %c0_60] : memref<8x4x32xbf16, #tpu.memory_space<vmem>>, vector<1x4x32xbf16>
    %158 = vector.shape_cast %157 : vector<1x4x32xbf16> to vector<4x32xbf16>
    %cst_61 = arith.constant dense<0.000000e+00> : vector<8x32xf32>
    %159 = tpu.matmul %156, %158, %cst_61 {dimension_numbers = #tpu.dot_dimension_numbers<[1], [0], [0], [1], [0, 0, 1, 1], [], []>} : vector<8x4xbf16>, vector<4x32xbf16>, vector<8x32xf32> -> vector<8x32xf32>
    %160 = arith.addf %136, %159 : vector<8x32xf32>
    %161 = vector.extract_strided_slice %15 {offsets = [0, 24], sizes = [8, 4], strides = [1, 1]} : vector<8x96xf32> to vector<8x4xf32>
    %162 = arith.truncf %161 : vector<8x4xf32> to vector<8x4xbf16>
    %163 = vector.extract_strided_slice %15 {offsets = [0, 56], sizes = [8, 4], strides = [1, 1]} : vector<8x96xf32> to vector<8x4xf32>
    %164 = arith.truncf %163 : vector<8x4xf32> to vector<8x4xbf16>
    %165 = vector.extract_strided_slice %15 {offsets = [0, 88], sizes = [8, 4], strides = [1, 1]} : vector<8x96xf32> to vector<8x4xf32>
    %166 = arith.truncf %165 : vector<8x4xf32> to vector<8x4xbf16>
    %cst_62 = arith.constant dense<0.000000e+00> : vector<8x8xf32>
    %167 = tpu.matmul %162, %164, %cst_62 {dimension_numbers = #tpu.dot_dimension_numbers<[1], [1], [0], [0], [0, 0, 1, 0], [], []>} : vector<8x4xbf16>, vector<8x4xbf16>, vector<8x8xf32> -> vector<8x8xf32>
    %cst_63 = arith.constant dense<0xFF800000> : vector<8xf32>
    %168 = vector.multi_reduction <maximumf>, %167, %cst_63 [1] : vector<8x8xf32> to vector<8xf32>
    %169 = vector.shape_cast %168 : vector<8xf32> to vector<8x1xf32>
    %170 = vector.broadcast %169 : vector<8x1xf32> to vector<8x8xf32>
    %171 = arith.subf %167, %170 : vector<8x8xf32>
    %172 = math.exp %171 : vector<8x8xf32>
    %cst_64 = arith.constant dense<0.000000e+00> : vector<8xf32>
    %173 = vector.multi_reduction <add>, %172, %cst_64 [1] : vector<8x8xf32> to vector<8xf32>
    %174 = vector.shape_cast %173 : vector<8xf32> to vector<8x1xf32>
    %175 = tpu.reciprocal %174 {approx = true} : vector<8x1xf32> -> vector<8x1xf32>
    %176 = vector.broadcast %175 : vector<8x1xf32> to vector<8x8xf32>
    %177 = arith.mulf %172, %176 : vector<8x8xf32>
    %178 = arith.truncf %177 : vector<8x8xf32> to vector<8x8xbf16>
    %cst_65 = arith.constant dense<0.000000e+00> : vector<8x4xf32>
    %179 = tpu.matmul %178, %166, %cst_65 {dimension_numbers = #tpu.dot_dimension_numbers<[1], [0], [0], [1], [0, 0, 1, 1], [], []>} : vector<8x8xbf16>, vector<8x4xbf16>, vector<8x4xf32> -> vector<8x4xf32>
    %180 = arith.truncf %179 : vector<8x4xf32> to vector<8x4xbf16>
    %c6_66 = arith.constant 6 : index
    %c0_67 = arith.constant 0 : index
    %c0_68 = arith.constant 0 : index
    %181 = vector.load %arg4[%c6_66, %c0_67, %c0_68] : memref<8x4x32xbf16, #tpu.memory_space<vmem>>, vector<1x4x32xbf16>
    %182 = vector.shape_cast %181 : vector<1x4x32xbf16> to vector<4x32xbf16>
    %cst_69 = arith.constant dense<0.000000e+00> : vector<8x32xf32>
    %183 = tpu.matmul %180, %182, %cst_69 {dimension_numbers = #tpu.dot_dimension_numbers<[1], [0], [0], [1], [0, 0, 1, 1], [], []>} : vector<8x4xbf16>, vector<4x32xbf16>, vector<8x32xf32> -> vector<8x32xf32>
    %184 = arith.addf %160, %183 : vector<8x32xf32>
    %185 = vector.extract_strided_slice %15 {offsets = [0, 28], sizes = [8, 4], strides = [1, 1]} : vector<8x96xf32> to vector<8x4xf32>
    %186 = arith.truncf %185 : vector<8x4xf32> to vector<8x4xbf16>
    %187 = vector.extract_strided_slice %15 {offsets = [0, 60], sizes = [8, 4], strides = [1, 1]} : vector<8x96xf32> to vector<8x4xf32>
    %188 = arith.truncf %187 : vector<8x4xf32> to vector<8x4xbf16>
    %189 = vector.extract_strided_slice %15 {offsets = [0, 92], sizes = [8, 4], strides = [1, 1]} : vector<8x96xf32> to vector<8x4xf32>
    %190 = arith.truncf %189 : vector<8x4xf32> to vector<8x4xbf16>
    %cst_70 = arith.constant dense<0.000000e+00> : vector<8x8xf32>
    %191 = tpu.matmul %186, %188, %cst_70 {dimension_numbers = #tpu.dot_dimension_numbers<[1], [1], [0], [0], [0, 0, 1, 0], [], []>} : vector<8x4xbf16>, vector<8x4xbf16>, vector<8x8xf32> -> vector<8x8xf32>
    %cst_71 = arith.constant dense<0xFF800000> : vector<8xf32>
    %192 = vector.multi_reduction <maximumf>, %191, %cst_71 [1] : vector<8x8xf32> to vector<8xf32>
    %193 = vector.shape_cast %192 : vector<8xf32> to vector<8x1xf32>
    %194 = vector.broadcast %193 : vector<8x1xf32> to vector<8x8xf32>
    %195 = arith.subf %191, %194 : vector<8x8xf32>
    %196 = math.exp %195 : vector<8x8xf32>
    %cst_72 = arith.constant dense<0.000000e+00> : vector<8xf32>
    %197 = vector.multi_reduction <add>, %196, %cst_72 [1] : vector<8x8xf32> to vector<8xf32>
    %198 = vector.shape_cast %197 : vector<8xf32> to vector<8x1xf32>
    %199 = tpu.reciprocal %198 {approx = true} : vector<8x1xf32> -> vector<8x1xf32>
    %200 = vector.broadcast %199 : vector<8x1xf32> to vector<8x8xf32>
    %201 = arith.mulf %196, %200 : vector<8x8xf32>
    %202 = arith.truncf %201 : vector<8x8xf32> to vector<8x8xbf16>
    %cst_73 = arith.constant dense<0.000000e+00> : vector<8x4xf32>
    %203 = tpu.matmul %202, %190, %cst_73 {dimension_numbers = #tpu.dot_dimension_numbers<[1], [0], [0], [1], [0, 0, 1, 1], [], []>} : vector<8x8xbf16>, vector<8x4xbf16>, vector<8x4xf32> -> vector<8x4xf32>
    %204 = arith.truncf %203 : vector<8x4xf32> to vector<8x4xbf16>
    %c7_74 = arith.constant 7 : index
    %c0_75 = arith.constant 0 : index
    %c0_76 = arith.constant 0 : index
    %205 = vector.load %arg4[%c7_74, %c0_75, %c0_76] : memref<8x4x32xbf16, #tpu.memory_space<vmem>>, vector<1x4x32xbf16>
    %206 = vector.shape_cast %205 : vector<1x4x32xbf16> to vector<4x32xbf16>
    %cst_77 = arith.constant dense<0.000000e+00> : vector<8x32xf32>
    %207 = tpu.matmul %204, %206, %cst_77 {dimension_numbers = #tpu.dot_dimension_numbers<[1], [0], [0], [1], [0, 0, 1, 1], [], []>} : vector<8x4xbf16>, vector<4x32xbf16>, vector<8x32xf32> -> vector<8x32xf32>
    %208 = arith.addf %184, %207 : vector<8x32xf32>
    %209 = vector.broadcast %3 : vector<1x32xf32> to vector<8x32xf32>
    %210 = arith.addf %208, %209 : vector<8x32xf32>
    %211 = arith.addf %1, %210 : vector<8x32xf32>
    %cst_78 = arith.constant dense<0.000000e+00> : vector<8xf32>
    %212 = vector.multi_reduction <add>, %211, %cst_78 [1] : vector<8x32xf32> to vector<8xf32>
    %213 = vector.shape_cast %212 : vector<8xf32> to vector<8x1xf32>
    %cst_79 = arith.constant 3.200000e+01 : f32
    %214 = vector.broadcast %cst_79 : f32 to vector<8x1xf32>
    %215 = arith.divf %213, %214 : vector<8x1xf32>
    %216 = vector.broadcast %215 : vector<8x1xf32> to vector<8x32xf32>
    %217 = arith.subf %211, %216 : vector<8x32xf32>
    %218 = arith.mulf %217, %217 : vector<8x32xf32>
    %cst_80 = arith.constant dense<0.000000e+00> : vector<8xf32>
    %219 = vector.multi_reduction <add>, %218, %cst_80 [1] : vector<8x32xf32> to vector<8xf32>
    %220 = vector.shape_cast %219 : vector<8xf32> to vector<8x1xf32>
    %cst_81 = arith.constant 3.200000e+01 : f32
    %221 = vector.broadcast %cst_81 : f32 to vector<8x1xf32>
    %222 = arith.divf %220, %221 : vector<8x1xf32>
    %223 = vector.broadcast %215 : vector<8x1xf32> to vector<8x32xf32>
    %224 = arith.subf %211, %223 : vector<8x32xf32>
    %cst_82 = arith.constant 9.99999974E-6 : f32
    %225 = vector.broadcast %cst_82 : f32 to vector<8x1xf32>
    %226 = arith.addf %222, %225 : vector<8x1xf32>
    %227 = math.rsqrt %226 : vector<8x1xf32>
    %228 = vector.broadcast %227 : vector<8x1xf32> to vector<8x32xf32>
    %229 = arith.mulf %224, %228 : vector<8x32xf32>
    %230 = vector.broadcast %4 : vector<1x32xf32> to vector<8x32xf32>
    %231 = arith.mulf %229, %230 : vector<8x32xf32>
    %232 = vector.broadcast %5 : vector<1x32xf32> to vector<8x32xf32>
    %233 = arith.addf %231, %232 : vector<8x32xf32>
    %234 = arith.truncf %233 : vector<8x32xf32> to vector<8x32xbf16>
    %cst_83 = arith.constant 0.000000e+00 : f32
    %235 = vector.broadcast %cst_83 : f32 to vector<8x32xf32>
    %c0_84 = arith.constant 0 : index
    %c0_85 = arith.constant 0 : index
    %236 = vector.load %arg5[%c0_84, %c0_85] : memref<32x2048xbf16, #tpu.memory_space<vmem>>, vector<32x512xbf16>
    %cst_86 = arith.constant dense<0.000000e+00> : vector<8x512xf32>
    %237 = tpu.matmul %234, %236, %cst_86 {dimension_numbers = #tpu.dot_dimension_numbers<[1], [0], [0], [1], [0, 0, 1, 1], [], []>} : vector<8x32xbf16>, vector<32x512xbf16>, vector<8x512xf32> -> vector<8x512xf32>
    %c4_87 = arith.constant 4 : index
    %c0_88 = arith.constant 0 : index
    %238 = vector.load %arg7[%c4_87, %c0_88] : memref<10x2048xf32, #tpu.memory_space<vmem>>, vector<1x512xf32>
    %239 = vector.broadcast %238 : vector<1x512xf32> to vector<8x512xf32>
    %240 = arith.addf %237, %239 : vector<8x512xf32>
    %cst_89 = arith.constant 0.000000e+00 : f32
    %241 = vector.broadcast %cst_89 : f32 to vector<8x512xf32>
    %242 = arith.maximumf %240, %241 : vector<8x512xf32>
    %243 = arith.truncf %242 : vector<8x512xf32> to vector<8x512xbf16>
    %c0_90 = arith.constant 0 : index
    %c0_91 = arith.constant 0 : index
    %244 = vector.load %arg6[%c0_90, %c0_91] : memref<2048x32xbf16, #tpu.memory_space<vmem>>, vector<512x32xbf16>
    %cst_92 = arith.constant dense<0.000000e+00> : vector<8x32xf32>
    %245 = tpu.matmul %243, %244, %cst_92 {dimension_numbers = #tpu.dot_dimension_numbers<[1], [0], [0], [1], [0, 0, 1, 1], [], []>} : vector<8x512xbf16>, vector<512x32xbf16>, vector<8x32xf32> -> vector<8x32xf32>
    %246 = arith.addf %235, %245 : vector<8x32xf32>
    %c0_93 = arith.constant 0 : index
    %c512 = arith.constant 512 : index
    %247 = vector.load %arg5[%c0_93, %c512] : memref<32x2048xbf16, #tpu.memory_space<vmem>>, vector<32x512xbf16>
    %cst_94 = arith.constant dense<0.000000e+00> : vector<8x512xf32>
    %248 = tpu.matmul %234, %247, %cst_94 {dimension_numbers = #tpu.dot_dimension_numbers<[1], [0], [0], [1], [0, 0, 1, 1], [], []>} : vector<8x32xbf16>, vector<32x512xbf16>, vector<8x512xf32> -> vector<8x512xf32>
    %c4_95 = arith.constant 4 : index
    %c512_96 = arith.constant 512 : index
    %249 = vector.load %arg7[%c4_95, %c512_96] : memref<10x2048xf32, #tpu.memory_space<vmem>>, vector<1x512xf32>
    %250 = vector.broadcast %249 : vector<1x512xf32> to vector<8x512xf32>
    %251 = arith.addf %248, %250 : vector<8x512xf32>
    %cst_97 = arith.constant 0.000000e+00 : f32
    %252 = vector.broadcast %cst_97 : f32 to vector<8x512xf32>
    %253 = arith.maximumf %251, %252 : vector<8x512xf32>
    %254 = arith.truncf %253 : vector<8x512xf32> to vector<8x512xbf16>
    %c512_98 = arith.constant 512 : index
    %c0_99 = arith.constant 0 : index
    %255 = vector.load %arg6[%c512_98, %c0_99] : memref<2048x32xbf16, #tpu.memory_space<vmem>>, vector<512x32xbf16>
    %cst_100 = arith.constant dense<0.000000e+00> : vector<8x32xf32>
    %256 = tpu.matmul %254, %255, %cst_100 {dimension_numbers = #tpu.dot_dimension_numbers<[1], [0], [0], [1], [0, 0, 1, 1], [], []>} : vector<8x512xbf16>, vector<512x32xbf16>, vector<8x32xf32> -> vector<8x32xf32>
    %257 = arith.addf %246, %256 : vector<8x32xf32>
    %c0_101 = arith.constant 0 : index
    %c1024 = arith.constant 1024 : index
    %258 = vector.load %arg5[%c0_101, %c1024] : memref<32x2048xbf16, #tpu.memory_space<vmem>>, vector<32x512xbf16>
    %cst_102 = arith.constant dense<0.000000e+00> : vector<8x512xf32>
    %259 = tpu.matmul %234, %258, %cst_102 {dimension_numbers = #tpu.dot_dimension_numbers<[1], [0], [0], [1], [0, 0, 1, 1], [], []>} : vector<8x32xbf16>, vector<32x512xbf16>, vector<8x512xf32> -> vector<8x512xf32>
    %c4_103 = arith.constant 4 : index
    %c1024_104 = arith.constant 1024 : index
    %260 = vector.load %arg7[%c4_103, %c1024_104] : memref<10x2048xf32, #tpu.memory_space<vmem>>, vector<1x512xf32>
    %261 = vector.broadcast %260 : vector<1x512xf32> to vector<8x512xf32>
    %262 = arith.addf %259, %261 : vector<8x512xf32>
    %cst_105 = arith.constant 0.000000e+00 : f32
    %263 = vector.broadcast %cst_105 : f32 to vector<8x512xf32>
    %264 = arith.maximumf %262, %263 : vector<8x512xf32>
    %265 = arith.truncf %264 : vector<8x512xf32> to vector<8x512xbf16>
    %c1024_106 = arith.constant 1024 : index
    %c0_107 = arith.constant 0 : index
    %266 = vector.load %arg6[%c1024_106, %c0_107] : memref<2048x32xbf16, #tpu.memory_space<vmem>>, vector<512x32xbf16>
    %cst_108 = arith.constant dense<0.000000e+00> : vector<8x32xf32>
    %267 = tpu.matmul %265, %266, %cst_108 {dimension_numbers = #tpu.dot_dimension_numbers<[1], [0], [0], [1], [0, 0, 1, 1], [], []>} : vector<8x512xbf16>, vector<512x32xbf16>, vector<8x32xf32> -> vector<8x32xf32>
    %268 = arith.addf %257, %267 : vector<8x32xf32>
    %c0_109 = arith.constant 0 : index
    %c1536 = arith.constant 1536 : index
    %269 = vector.load %arg5[%c0_109, %c1536] : memref<32x2048xbf16, #tpu.memory_space<vmem>>, vector<32x512xbf16>
    %cst_110 = arith.constant dense<0.000000e+00> : vector<8x512xf32>
    %270 = tpu.matmul %234, %269, %cst_110 {dimension_numbers = #tpu.dot_dimension_numbers<[1], [0], [0], [1], [0, 0, 1, 1], [], []>} : vector<8x32xbf16>, vector<32x512xbf16>, vector<8x512xf32> -> vector<8x512xf32>
    %c4_111 = arith.constant 4 : index
    %c1536_112 = arith.constant 1536 : index
    %271 = vector.load %arg7[%c4_111, %c1536_112] : memref<10x2048xf32, #tpu.memory_space<vmem>>, vector<1x512xf32>
    %272 = vector.broadcast %271 : vector<1x512xf32> to vector<8x512xf32>
    %273 = arith.addf %270, %272 : vector<8x512xf32>
    %cst_113 = arith.constant 0.000000e+00 : f32
    %274 = vector.broadcast %cst_113 : f32 to vector<8x512xf32>
    %275 = arith.maximumf %273, %274 : vector<8x512xf32>
    %276 = arith.truncf %275 : vector<8x512xf32> to vector<8x512xbf16>
    %c1536_114 = arith.constant 1536 : index
    %c0_115 = arith.constant 0 : index
    %277 = vector.load %arg6[%c1536_114, %c0_115] : memref<2048x32xbf16, #tpu.memory_space<vmem>>, vector<512x32xbf16>
    %cst_116 = arith.constant dense<0.000000e+00> : vector<8x32xf32>
    %278 = tpu.matmul %276, %277, %cst_116 {dimension_numbers = #tpu.dot_dimension_numbers<[1], [0], [0], [1], [0, 0, 1, 1], [], []>} : vector<8x512xbf16>, vector<512x32xbf16>, vector<8x32xf32> -> vector<8x32xf32>
    %279 = arith.addf %268, %278 : vector<8x32xf32>
    %280 = vector.broadcast %6 : vector<1x32xf32> to vector<8x32xf32>
    %281 = arith.addf %279, %280 : vector<8x32xf32>
    %282 = arith.addf %233, %281 : vector<8x32xf32>
    %cst_117 = arith.constant dense<0.000000e+00> : vector<8xf32>
    %283 = vector.multi_reduction <add>, %282, %cst_117 [1] : vector<8x32xf32> to vector<8xf32>
    %284 = vector.shape_cast %283 : vector<8xf32> to vector<8x1xf32>
    %cst_118 = arith.constant 3.200000e+01 : f32
    %285 = vector.broadcast %cst_118 : f32 to vector<8x1xf32>
    %286 = arith.divf %284, %285 : vector<8x1xf32>
    %287 = vector.broadcast %286 : vector<8x1xf32> to vector<8x32xf32>
    %288 = arith.subf %282, %287 : vector<8x32xf32>
    %289 = arith.mulf %288, %288 : vector<8x32xf32>
    %cst_119 = arith.constant dense<0.000000e+00> : vector<8xf32>
    %290 = vector.multi_reduction <add>, %289, %cst_119 [1] : vector<8x32xf32> to vector<8xf32>
    %291 = vector.shape_cast %290 : vector<8xf32> to vector<8x1xf32>
    %cst_120 = arith.constant 3.200000e+01 : f32
    %292 = vector.broadcast %cst_120 : f32 to vector<8x1xf32>
    %293 = arith.divf %291, %292 : vector<8x1xf32>
    %294 = vector.broadcast %286 : vector<8x1xf32> to vector<8x32xf32>
    %295 = arith.subf %282, %294 : vector<8x32xf32>
    %cst_121 = arith.constant 9.99999974E-6 : f32
    %296 = vector.broadcast %cst_121 : f32 to vector<8x1xf32>
    %297 = arith.addf %293, %296 : vector<8x1xf32>
    %298 = math.rsqrt %297 : vector<8x1xf32>
    %299 = vector.broadcast %298 : vector<8x1xf32> to vector<8x32xf32>
    %300 = arith.mulf %295, %299 : vector<8x32xf32>
    %301 = vector.broadcast %7 : vector<1x32xf32> to vector<8x32xf32>
    %302 = arith.mulf %300, %301 : vector<8x32xf32>
    %303 = vector.broadcast %8 : vector<1x32xf32> to vector<8x32xf32>
    %304 = arith.addf %302, %303 : vector<8x32xf32>
    %cst_122 = arith.constant 0.000000e+00 : f32
    %305 = vector.broadcast %cst_122 : f32 to vector<8x32xf32>
    %306 = arith.cmpf oge, %304, %305 : vector<8x32xf32>
    %cst_123 = arith.constant 0.00999999977 : f32
    %307 = vector.broadcast %cst_123 : f32 to vector<8x32xf32>
    %308 = arith.mulf %307, %304 : vector<8x32xf32>
    %309 = arith.select %306, %304, %308 : vector<8x32xi1>, vector<8x32xf32>
    %cst_124 = arith.constant dense<0.000000e+00> : vector<1x8xf32>
    %310 = tpu.matmul %9, %309, %cst_124 {dimension_numbers = #tpu.dot_dimension_numbers<[1], [1], [0], [0], [0, 0, 1, 0], [], []>} : vector<1x32xf32>, vector<8x32xf32>, vector<1x8xf32> -> vector<1x8xf32>
    %311 = vector.broadcast %10 : vector<1x1xf32> to vector<1x8xf32>
    %312 = arith.addf %310, %311 : vector<1x8xf32>
    %c0_125 = arith.constant 0 : index
    %c0_126 = arith.constant 0 : index
    %c0_127 = arith.constant 0 : index
    %313 = vector.load %arg2[%c0_125, %c0_126, %c0_127] : memref<1x1x8xf32, #tpu.memory_space<vmem>>, vector<1x1x8xf32>
    %314 = vector.shape_cast %313 : vector<1x1x8xf32> to vector<1x8xf32>
    %cst_128 = arith.constant 1.000000e+00 : f32
    %315 = vector.broadcast %cst_128 : f32 to vector<1x8xf32>
    %316 = arith.subf %315, %314 : vector<1x8xf32>
    %317 = arith.mulf %312, %316 : vector<1x8xf32>
    %cst_129 = arith.constant 1.000000e+30 : f32
    %318 = vector.broadcast %cst_129 : f32 to vector<1x8xf32>
    %319 = arith.mulf %318, %314 : vector<1x8xf32>
    %320 = arith.subf %317, %319 : vector<1x8xf32>
    %c0_130 = arith.constant 0 : index
    %c0_131 = arith.constant 0 : index
    %c0_132 = arith.constant 0 : index
    %321 = vector.load %arg8[%c0_130, %c0_131, %c0_132] : memref<1x1x8xf32, #tpu.memory_space<vmem>>, vector<1x1x8xf32>
    %322 = vector.shape_cast %321 : vector<1x1x8xf32> to vector<1x8xf32>
    %323 = vector.shape_cast %320 : vector<1x8xf32> to vector<1x1x8xf32>
    tpu.vector_store %arg8[%c0_130, %c0_131, %c0_132], %323 {strides = array<i32>} : memref<1x1x8xf32, #tpu.memory_space<vmem>>, vector<1x1x8xf32>,
    return
  }
  func.func @transform_0(%arg0: i32) -> (i32, i32, i32) {
    %c0_i32 = arith.constant 0 : i32
    %c0_i32_0 = arith.constant 0 : i32
    %c0_i32_1 = arith.constant 0 : i32
    return %arg0, %c0_i32, %c0_i32_0 : i32, i32, i32
  }
  func.func @transform_1(%arg0: i32) -> (i32, i32, i32) {
    %c0_i32 = arith.constant 0 : i32
    %c0_i32_0 = arith.constant 0 : i32
    %c0_i32_1 = arith.constant 0 : i32
    return %arg0, %c0_i32, %c0_i32_0 : i32, i32, i32
  }
  func.func @transform_2(%arg0: i32) -> (i32, i32) {
    %c0_i32 = arith.constant 0 : i32
    %c0_i32_0 = arith.constant 0 : i32
    %c0_i32_1 = arith.constant 0 : i32
    return %c0_i32, %c0_i32_0 : i32, i32
  }
  func.func @transform_3(%arg0: i32) -> (i32, i32, i32) {
    %c0_i32 = arith.constant 0 : i32
    %c0_i32_0 = arith.constant 0 : i32
    %c0_i32_1 = arith.constant 0 : i32
    %c0_i32_2 = arith.constant 0 : i32
    return %c0_i32, %c0_i32_0, %c0_i32_1 : i32, i32, i32
  }
  func.func @transform_4(%arg0: i32) -> (i32, i32) {
    %c0_i32 = arith.constant 0 : i32
    %c0_i32_0 = arith.constant 0 : i32
    %c0_i32_1 = arith.constant 0 : i32
    return %c0_i32, %c0_i32_0 : i32, i32
  }
  func.func @transform_5(%arg0: i32) -> (i32, i32) {
    %c0_i32 = arith.constant 0 : i32
    %c0_i32_0 = arith.constant 0 : i32
    %c0_i32_1 = arith.constant 0 : i32
    return %c0_i32, %c0_i32_0 : i32, i32
  }
  func.func @transform_6(%arg0: i32) -> (i32, i32) {
    %c0_i32 = arith.constant 0 : i32
    %c0_i32_0 = arith.constant 0 : i32
    %c0_i32_1 = arith.constant 0 : i32
    return %c0_i32, %c0_i32_0 : i32, i32
  }
  func.func @transform_7(%arg0: i32) -> (i32, i32, i32) {
    %c0_i32 = arith.constant 0 : i32
    %c0_i32_0 = arith.constant 0 : i32
    %c0_i32_1 = arith.constant 0 : i32
    return %arg0, %c0_i32, %c0_i32_0 : i32, i32, i32
  }
}

</mosaic_0001>

<bundles_post_ra>
// kernel: tpu_custom_call.1
= control target key start
LH: loop header
LB: loop body
LE: loop exit
PB: predicated region body
PF: predicated region fallthrough
CT: control target
= control target key end

     0   :  { %12 = vsyncpa [#allocation3], 0  ;;  %s5716_s0 = inlined_call_operand.vmem [shape: f32[2,8,32], index: 0, kind: input, shape index: {}]   ;;  %s5717_s1 = inlined_call_operand.vmem [shape: f32[2,1,8], index: 1, kind: input, shape index: {}]   ;;  %s5718_s2 = inlined_call_operand.vmem [shape: bf16[32,96], index: 2, kind: input, shape index: {}]   ;;  %s5719_s3 = inlined_call_operand.vmem [shape: bf16[8,4,32], index: 3, kind: input, shape index: {}]   ;;  %s5720_s4 = inlined_call_operand.vmem [shape: bf16[32,2048], index: 4, kind: input, shape index: {}]   ;;  %s5721_s5 = inlined_call_operand.vmem [shape: bf16[2048,32], index: 5, kind: input, shape index: {}]   ;;  %s5722_s6 = inlined_call_operand.vmem [shape: f32[10,2048], index: 6, kind: input, shape index: {}]   ;;  %s5723_s7 = inlined_call_operand.hbm [shape: f32[2,1,8], index: 7, kind: output, shape index: {}]  }
   0x1   :  { %14 = vsyncpa [#allocation3 + $0x1], 0  ;;  %s4802_s24 = smov 0   ;;  %s4804_s25 = smov 0  }
   0x2   :  { %s4806_s26 = smov 0   ;;  %s4808_s27 = smov 0  }
   0x3 LB: > { %s4823_s28 = sadd.s32 4294967295, %s4733_s27   ;;  %s3837_s29 = sadd.s32 4294967294, %s4733_s27   ;;  %s4733_s27 = sphi %s4808_s27, %s5729_s27   ;;  %s4729_s26 = sphi %s4806_s26, %s5728_s26   ;;  %s4725_s25 = sphi %s4804_s25, %s5727_s25   ;;  %s4721_s24 = sphi %s4802_s24, %s5726_s24  }
   0x4   : > { %s4827_s30 = sadd.s32 1, %s4733_s27   ;;  %s184_s8 = sadd.s32 1, %s4729_s26 }
   0x5   : > { %s181_s9 = ssub.s32 %s4733_s27, %s4827_s30  ;;  %p194_p0 = scmp.ne.s32.totalorder %s4729_s26, %s4725_s25 }
   0x6   : > { %p182_p1 = scmp.eq.s32.totalorder %s181_s9, 0  ;;  %p195_p2 = scmp.eq.s32.totalorder %s4823_s28, 1 }
   0x7   : > { %p200_p3 = scmp.ne.s32.totalorder %s4725_s25, %s4721_s24  ;;  %p201_p4 = scmp.eq.s32.totalorder %s3837_s29, 1 }
   0x8   : > { %s4838_s10 = scalar_select %p182_p1, %s4729_s26, %s184_s8  }
   0x9   : > { %p4840_p5 = por %p195_p2, %p194_p0  ;;  %p4844_p6 = por %p201_p4, %p200_p3 }
   0xa   : > { %p3840_p7 = scmp.ge.s32.totalorder %s4733_s27, 1  ;;  %p247_p8 = scmp.lt.s32.totalorder %s4733_s27, 3 }
   0xc   : > { %p248_p9 = pnand %p3840_p7, %p247_p8 }
   0xd   : > { %p280_p10 = scmp.lt.s32.totalorder (!%p248_p9), %s4823_s28, 1  ;;  %s4737_s29 = smov (!%p248_p9), 124  }
   0xe   : > { %251 = sbr.rel (%p248_p9) target bundleno = 6245 (0x1865), region = 48  ;;  %s4738_s8 = smov (!%p248_p9), 96  }
   0xf   : > { %s4739_s9 = smov (!%p248_p9), 92   ;;  %s4740_s13 = smov (!%p248_p9), 64  }
  0x10   : > { %s4741_s14 = smov (!%p248_p9), 60   ;;  %s4742_s15 = smov (!%p248_p9), 120  }
  0x11   : > { %s4743_s16 = smov (!%p248_p9), 88   ;;  %s4744_s23 = smov (!%p248_p9), 84  }
  0x12   : > { %s4750_s20 = smov (!%p248_p9), 76   ;;  %s4751_s22 = smov (!%p248_p9), 108  }
  0x13   : > { %v4506_v0 = vld [vmem:[%s5718_s2 + $0x8] sm:$0xff]   ;;  %v4735_v1 = vmov 0.0   ;;  %v4507_v2 = vld [vmem:[%s5718_s2] sm:$0xff]   ;;  %vm4736_vm0 = vmmov 0   ;;  %s4865_s17 = scalar_select %p280_p10, %s4823_s28, 1  ;;  %vm315_vm1 = vcmask 261120  }
  0x14   : > { %4282 = vmatprep.subr.bf16.mxu0 %v4735_v1  ;;  %4290 = vmatprep.subr.bf16.mxu1 %v4735_v1  ;;  %v289_v5 = vld [vmem:[%s5722_s6] ss:$0 sm:$0xff]  ;;  %vm363_vm2 = vcmask 31744   ;;  %vm410_vm3 = vcmask 64512   ;;  %vm428_vm4 = vcmask 1043456   ;;  %vm590_vm5 = vcmask 1041408  }
  0x15   : > { %4283 = vmatpush3.bf16.msra.mxu0 %v4506_v0  ;;  %4286 = vmatprep.mubr.msk.bf16.mxu0 %vm4736_vm0, %v4735_v1  ;;  %s3841_s18 = sshll.u32 %s4865_s17, 3  ;;  %v473_v49 = vld [vmem:[%s5719_s3] sm:$0x3]  ;;  %v3849_v51 = vld [vmem:[%s5719_s3 + $0x2] sm:$0x3]  ;;  %s4757_s19 = smov 100  }
  0x16   : > { %4284 = vmatprep.subr.bf16.mxu0 %v4735_v1  ;;  %4292 = vmatprep.mubr.msk.bf16.mxu1 %vm4736_vm0, %v4735_v1  ;;  %s4871_s21 = scalar_lea.vmem %s5716_s0, %s3841_s18  ;;  %v638_v50 = vsel %vm590_vm5, %v473_v49, 0  ;;  %v592_v52 = vsel %vm590_vm5, %v3849_v51, 0  ;;  %s4756_s18 = smov 68   ;;  %vm3758_vm7 = vcmask 57344  }
  0x17   : > { %v288_v3 = vld [vmem:[%s4871_s21] sm:$0xff] }
  0x18   : > { %v298_v4 = vpack.c.bf16 %v288_v3, %v288_v3 }
  0x19   : > { %4285 = vmatpush3.bf16.msra.mxu0 %v4507_v2 }
  0x1a   : > { %4296 = vmatprep.subr.bf16.mxu0 %v4735_v1 }
  0x1c   : > { %4287 = vmatmul.mubr.msk.bf16.vlgmr.msra.gmra.mxu0 %vm315_vm1, %v298_v4 }
  0x1d   : > { %4298 = vmatprep.mubr.msk.bf16.mxu0 %vm4736_vm0, %v4735_v1 }
  0xdc   : > { %v353_v6 = vpop.f32.mrf.mxu0 }
  0xdd   : > { %v354_v7 = vadd.f32 %v353_v6, %v289_v5 }
  0xde   : > { %v4288_v8 = vpop.f32.mrf.mxu0 }
  0xdf   : > { %v4881_v9 = vpack.c.bf16 %v354_v7, %v354_v7 }
  0xe0   : > { %v356_v10 = vpop.f32.mrf.mxu0 }
  0xe1   : > { %474 = vrot.lane.b32.xlu1 %v4881_v9, %s4737_s29  ;;  %361 = vrot.lane.b32.xlu0 %v4881_v9, %s4738_s8  ;;  %s4745_s29 = smov 116   ;;  %s4746_s8 = smov 56  }
  0xe2   : > { %v4289_v11 = vpop.f32.mrf.mxu0 }
  0xe5   : > { %476 = vrot.lane.b32.xlu0 %v4881_v9, %s4739_s9  ;;  %s4753_s9 = smov 44  }
 0x153   : > { %v362_v12 = vpop.permute.xlu0 %361  ;;  %v475_v16 = vpop.permute.xlu1 %474 }
 0x154   : > { %v368_v13 = vsel %vm363_vm2, %v362_v12, 0 }
 0x155   : > { %4291 = vmatpush3.bf16.xpose.msra.mxu1 %v368_v13 }
 0x156   : > { %4302 = vmatprep.subr.bf16.mxu1 %v4735_v1 }
 0x157   : > { %v477_v14 = vpop.permute.xlu0 %476 }
 0x158   : > { %v482_v15 = vsel %vm363_vm2, %v477_v14, 0 }
 0x15c   : > { %4293 = vmatmul.mubr.msk.bf16.vlgmr.msra.gmra.mxu1 %vm363_vm2, %v4881_v9 }
 0x15d   : > { %4303 = vmatpush3.bf16.xpose.msra.mxu1 %v482_v15  ;;  %4304 = vmatprep.mubr.msk.bf16.mxu1 %vm4736_vm0, %v4735_v1 }
 0x15e   : > { %4314 = vmatprep.subr.bf16.mxu1 %v4735_v1 }
 0x164   : > { %4305 = vmatmul.mubr.msk.bf16.vlgmr.msra.gmra.mxu1 %vm363_vm2, %v475_v16 }
 0x165   : > { %4316 = vmatprep.mubr.msk.bf16.mxu1 %vm4736_vm0, %v4735_v1  ;;  %4315 = vmatpush3.bf16.msra.mxu1 %v592_v52 }
 0x166   : > { %4326 = vmatprep.subr.bf16.mxu1 %v4735_v1 }
 0x21c   : > { %v404_v17 = vpop.f32.mrf.mxu1 }
 0x21d   : > { %v411_v18 = vsel %vm410_vm3, %v404_v17, -inf }
 0x21e   : > { %412 = vmax.xlane.f32.xlu1 %v411_v18  ;;  %v4294_v19 = vpop.f32.mrf.mxu1 }
 0x220   : > { %v407_v20 = vpop.f32.mrf.mxu1 }
 0x222   : > { %v4295_v21 = vpop.f32.mrf.mxu1 }
 0x224   : > { %v518_v22 = vpop.f32.mrf.mxu1 }
 0x225   : > { %v524_v23 = vsel %vm410_vm3, %v518_v22, -inf }
 0x226   : > { %525 = vmax.xlane.f32.xlu0 %v524_v23  ;;  %v4306_v24 = vpop.f32.mrf.mxu1 }
 0x228   : > { %v521_v25 = vpop.f32.mrf.mxu1 }
 0x22a   : > { %v4307_v26 = vpop.f32.mrf.mxu1 }
 0x2a7   : > { %v413_v27 = vpop.xlane.xlu1 %412 }
 0x2a8   : > { %v414_v28 = vsub.f32 %v404_v17, %v413_v27 }
 0x2aa   : > { %v415_v29 = vmul.f32 1.442695, %v414_v28 }
 0x2ac   : > { %4636 = vpow2.f32 %v415_v29 }
 0x2af   : > { %v526_v30 = vpop.xlane.xlu0 %525 }
 0x2b0   : > { %v527_v31 = vsub.f32 %v518_v22, %v526_v30 }
 0x2b2   : > { %v528_v32 = vmul.f32 1.442695, %v527_v31 }
 0x2b4   : > { %4638 = vpow2.f32 %v528_v32  ;;  %v3854_v32 = vld [vmem:[%s5719_s3 + $0x4] sm:$0x3] }
 0x2b9   : > { %v4637_v33 = vpop.eup %4636 }
 0x2ba   : > { %v417_v34 = vsel %vm410_vm3, %v4637_v33, 0.0 }
 0x2bb   : > { %418 = vadd.xlane.f32.xlu0 %v417_v34 }
 0x2c1   : > { %v4639_v35 = vpop.eup %4638 }
 0x2c2   : > { %v530_v36 = vsel %vm410_vm3, %v4639_v35, 0.0 }
 0x2c3   : > { %531 = vadd.xlane.f32.xlu1 %v530_v36 }
 0x2d1   : > { %423 = vrot.lane.b32.xlu0 %v4881_v9, %s4740_s13  ;;  %s4754_s13 = smov 104  }
 0x2d4   : > { %536 = vrot.lane.b32.xlu1 %v4881_v9, %s4741_s14  ;;  %s4747_s14 = smov 52  }
 0x2d5   : > { %680 = vrot.lane.b32.xlu0 %v4881_v9, %s4742_s15  ;;  %s4748_s15 = smov 112  }
 0x2d8   : > { %682 = vrot.lane.b32.xlu1 %v4881_v9, %s4743_s16  ;;  %s4749_s16 = smov 80  }
 0x344   : > { %v419_v37 = vpop.xlane.xlu0 %418 }
 0x345   : > { %4640 = vrcp.f32 %v419_v37 }
 0x348   : > { %v424_v38 = vpop.permute.xlu0 %423 }
 0x349   : > { %v430_v39 = vsel %vm428_vm4, %v424_v38, 0 }
 0x34a   : > { %4297 = vmatpush3.bf16.msra.mxu0 %v430_v39 }
 0x34b   : > { %4308 = vmatprep.subr.bf16.mxu0 %v4735_v1 }
 0x34c   : > { %v532_v40 = vpop.xlane.xlu1 %531  ;;  %v681_v2 = vpop.permute.xlu0 %680 }
 0x34d   : > { %4642 = vrcp.f32 %v532_v40 }
 0x350   : > { %v537_v43 = vpop.permute.xlu1 %536 }
 0x351   : > { %v542_v45 = vsel %vm428_vm4, %v537_v43, 0 }
 0x352   : > { %v4641_v41 = vpop.eup %4640 }
 0x353   : > { %v421_v42 = vmul.f32 %v4641_v41, %v4637_v33  ;;  %v797_v33 = vsel %vm590_vm5, %v3854_v32, 0  ;;  %v3862_v32 = vld [vmem:[%s5719_s3 + $0x8] sm:$0x3] }
 0x354   : > { %v683_v58 = vpop.permute.xlu1 %682 }
 0x355   : > { %v422_v44 = vpack.c.bf16 %v421_v42, %v421_v42  ;;  %v688_v62 = vsel %vm363_vm2, %v683_v58, 0 }
 0x357   : > { %4299 = vmatmul.mubr.msk.bf16.vlgmr.msra.gmra.mxu0 %vm410_vm3, %v422_v44 }
 0x358   : > { %4309 = vmatpush3.bf16.msra.mxu0 %v542_v45  ;;  %4310 = vmatprep.mubr.msk.bf16.mxu0 %vm4736_vm0, %v4735_v1 }
 0x359   : > { %4320 = vmatprep.subr.bf16.mxu0 %v4735_v1 }
 0x35a   : > { %v4643_v46 = vpop.eup %4642 }
 0x35b   : > { %v534_v47 = vmul.f32 %v4643_v46, %v4639_v35 }
 0x35d   : > { %v535_v48 = vpack.c.bf16 %v534_v47, %v534_v47 }
 0x35f   : > { %4311 = vmatmul.mubr.msk.bf16.vlgmr.msra.gmra.mxu0 %vm410_vm3, %v535_v48 }
 0x360   : > { %4322 = vmatprep.mubr.msk.bf16.mxu0 %vm4736_vm0, %v4735_v1  ;;  %4321 = vmatpush3.bf16.msra.mxu0 %v638_v50 }
 0x361   : > { %4332 = vmatprep.subr.bf16.mxu0 %v4735_v1 }
 0x417   : > { %v466_v53 = vpop.f32.mrf.mxu0 }
 0x418   : > { %v472_v54 = vpack.c.bf16 %v466_v53, %v466_v53 }
 0x419   : > { %v4300_v55 = vpop.f32.mrf.mxu0 }
 0x41a   : > { %4323 = vmatmul.mubr.msk.bf16.vlgmr.msra.gmra.mxu0 %vm363_vm2, %v472_v54 }
 0x41b   : > { %v469_v56 = vpop.f32.mrf.mxu0  ;;  %4334 = vmatprep.mubr.msk.bf16.mxu0 %vm4736_vm0, %v4735_v1 }
 0x41d   : > { %v4301_v57 = vpop.f32.mrf.mxu0 }
 0x41f   : > { %v578_v59 = vpop.f32.mrf.mxu0 }
 0x420   : > { %v584_v60 = vpack.c.bf16 %v578_v59, %v578_v59 }
 0x421   : > { %v4312_v61 = vpop.f32.mrf.mxu0 }
 0x422   : > { %4317 = vmatmul.mubr.msk.bf16.vlgmr.msra.gmra.mxu1 %vm363_vm2, %v584_v60 }
 0x423   : > { %4327 = vmatpush3.bf16.xpose.msra.mxu1 %v688_v62  ;;  %v581_v63 = vpop.f32.mrf.mxu0  ;;  %4328 = vmatprep.mubr.msk.bf16.mxu1 %vm4736_vm0, %v4735_v1 }
 0x424   : > { %4338 = vmatprep.subr.bf16.mxu1 %v4735_v1  ;;  %v3858_v63 = vld [vmem:[%s5719_s3 + $0x6] sm:$0x3] }
 0x425   : > { %v4313_v0 = vpop.f32.mrf.mxu0 }
 0x426   : > { %v957_v0 = vsel %vm590_vm5, %v3858_v63, 0  ;;  %v3866_v63 = vld [vmem:[%s5719_s3 + $0xa] sm:$0x3] }
 0x42a   : > { %4329 = vmatmul.mubr.msk.bf16.vlgmr.msra.gmra.mxu1 %vm363_vm2, %v681_v2 }
 0x42b   : > { %4340 = vmatprep.mubr.msk.bf16.mxu1 %vm4736_vm0, %v4735_v1  ;;  %4339 = vmatpush3.bf16.msra.mxu1 %v797_v33  ;;  %v1117_v33 = vsel %vm590_vm5, %v3862_v32, 0  ;;  %v3870_v32 = vld [vmem:[%s5719_s3 + $0xc] sm:$0x3] }
 0x42c   : > { %4350 = vmatprep.subr.bf16.mxu1 %v4735_v1 }
 0x4da   : > { %v674_v3 = vpop.f32.mrf.mxu0 }
 0x4dc   : > { %v4324_v4 = vpop.f32.mrf.mxu0 }
 0x4de   : > { %v677_v5 = vpop.f32.mrf.mxu0 }
 0x4e0   : > { %v4325_v6 = vpop.f32.mrf.mxu0 }
 0x4e2   : > { %v628_v7 = vpop.f32.mrf.mxu1 }
 0x4e3   : > { %v4936_v8 = vadd.f32 %v674_v3, %v628_v7 }
 0x4e4   : > { %v4318_v10 = vpop.f32.mrf.mxu1 }
 0x4e6   : > { %v631_v11 = vpop.f32.mrf.mxu1 }
 0x4e8   : > { %v4319_v12 = vpop.f32.mrf.mxu1 }
 0x4ea   : > { %v724_v13 = vpop.f32.mrf.mxu1 }
 0x4eb   : > { %v730_v14 = vsel %vm410_vm3, %v724_v13, -inf }
 0x4ec   : > { %731 = vmax.xlane.f32.xlu1 %v730_v14  ;;  %v4330_v15 = vpop.f32.mrf.mxu1 }
 0x4ee   : > { %v727_v16 = vpop.f32.mrf.mxu1 }
 0x4f0   : > { %v4331_v17 = vpop.f32.mrf.mxu1 }
 0x4fd   : > { %842 = vrot.lane.b32.xlu1 %v4881_v9, %s4744_s23  ;;  %s4752_s23 = smov 48  }
 0x501   : > { %840 = vrot.lane.b32.xlu1 %v4881_v9, %s4745_s29  ;;  %s4759_s29 = smov 36  }
 0x575   : > { %v732_v18 = vpop.xlane.xlu1 %731 }
 0x576   : > { %v733_v19 = vsub.f32 %v724_v13, %v732_v18 }
 0x578   : > { %v734_v20 = vmul.f32 1.442695, %v733_v19 }
 0x579   : > { %v843_v28 = vpop.permute.xlu1 %842 }
 0x57a   : > { %4644 = vpow2.f32 %v734_v20  ;;  %v848_v30 = vsel %vm363_vm2, %v843_v28, 0 }
 0x57d   : > { %v841_v31 = vpop.permute.xlu1 %840 }
 0x587   : > { %v4645_v21 = vpop.eup %4644 }
 0x588   : > { %v736_v22 = vsel %vm410_vm3, %v4645_v21, 0.0 }
 0x589   : > { %737 = vadd.xlane.f32.xlu0 %v736_v22 }
 0x59f   : > { %742 = vrot.lane.b32.xlu0 %v4881_v9, %s4746_s8 }
 0x612   : > { %v738_v23 = vpop.xlane.xlu0 %737 }
 0x613   : > { %4646 = vrcp.f32 %v738_v23 }
 0x616   : > { %v743_v24 = vpop.permute.xlu0 %742 }
 0x617   : > { %v748_v25 = vsel %vm428_vm4, %v743_v24, 0 }
 0x618   : > { %4333 = vmatpush3.bf16.msra.mxu0 %v748_v25 }
 0x619   : > { %4344 = vmatprep.subr.bf16.mxu0 %v4735_v1 }
 0x620   : > { %v4647_v26 = vpop.eup %4646 }
 0x621   : > { %v740_v27 = vmul.f32 %v4647_v26, %v4645_v21 }
 0x623   : > { %v741_v29 = vpack.c.bf16 %v740_v27, %v740_v27 }
 0x625   : > { %4335 = vmatmul.mubr.msk.bf16.vlgmr.msra.gmra.mxu0 %vm410_vm3, %v741_v29 }
 0x626   : > { %4345 = vmatpush3.bf16.xpose.msra.mxu0 %v848_v30  ;;  %4346 = vmatprep.mubr.msk.bf16.mxu0 %vm4736_vm0, %v4735_v1 }
 0x627   : > { %4356 = vmatprep.subr.bf16.mxu0 %v4735_v1 }
 0x62d   : > { %4347 = vmatmul.mubr.msk.bf16.vlgmr.msra.gmra.mxu0 %vm363_vm2, %v841_v31 }
 0x62e   : > { %4358 = vmatprep.mubr.msk.bf16.mxu0 %vm4736_vm0, %v4735_v1  ;;  %4357 = vmatpush3.bf16.msra.mxu0 %v957_v0  ;;  %v1277_v0 = vsel %vm590_vm5, %v3866_v63, 0 }
 0x62f   : > { %4368 = vmatprep.subr.bf16.mxu0 %v4735_v1 }
 0x6e5   : > { %v784_v34 = vpop.f32.mrf.mxu0 }
 0x6e6   : > { %v790_v35 = vpack.c.bf16 %v784_v34, %v784_v34 }
 0x6e7   : > { %v4336_v36 = vpop.f32.mrf.mxu0 }
 0x6e8   : > { %4341 = vmatmul.mubr.msk.bf16.vlgmr.msra.gmra.mxu1 %vm363_vm2, %v790_v35 }
 0x6e9   : > { %v787_v37 = vpop.f32.mrf.mxu0  ;;  %4352 = vmatprep.mubr.msk.bf16.mxu1 %vm4736_vm0, %v4735_v1 }
 0x6eb   : > { %v4337_v38 = vpop.f32.mrf.mxu0 }
 0x6ed   : > { %v884_v39 = vpop.f32.mrf.mxu0 }
 0x6ee   : > { %v890_v40 = vsel %vm410_vm3, %v884_v39, -inf }
 0x6ef   : > { %891 = vmax.xlane.f32.xlu0 %v890_v40  ;;  %v4348_v41 = vpop.f32.mrf.mxu0 }
 0x6f1   : > { %v887_v42 = vpop.f32.mrf.mxu0 }
 0x6f3   : > { %v4349_v43 = vpop.f32.mrf.mxu0 }
 0x705   : > { %902 = vrot.lane.b32.xlu0 %v4881_v9, %s4747_s14  ;;  %s4755_s14 = smov 72  }
 0x709   : > { %1000 = vrot.lane.b32.xlu0 %v4881_v9, %s4748_s15 }
 0x778   : > { %v892_v44 = vpop.xlane.xlu0 %891 }
 0x779   : > { %v893_v45 = vsub.f32 %v884_v39, %v892_v44 }
 0x77b   : > { %v894_v46 = vmul.f32 1.442695, %v893_v45 }
 0x77c   : > { %v903_v47 = vpop.permute.xlu0 %902 }
 0x77d   : > { %4648 = vpow2.f32 %v894_v46  ;;  %v908_v48 = vsel %vm428_vm4, %v903_v47, 0 }
 0x77e   : > { %4351 = vmatpush3.bf16.msra.mxu1 %v908_v48 }
 0x77f   : > { %4362 = vmatprep.subr.bf16.mxu1 %v4735_v1 }
 0x780   : > { %v1001_v62 = vpop.permute.xlu0 %1000 }
 0x78a   : > { %v4649_v49 = vpop.eup %4648 }
 0x78b   : > { %v896_v50 = vsel %vm410_vm3, %v4649_v49, 0.0 }
 0x78c   : > { %897 = vadd.xlane.f32.xlu1 %v896_v50 }
 0x79d   : > { %1002 = vrot.lane.b32.xlu1 %v4881_v9, %s4749_s16 }
 0x7a8   : > { %v833_v51 = vpop.f32.mrf.mxu1 }
 0x7a9   : > { %v839_v52 = vadd.f32 %v833_v51, %v4936_v8 }
 0x7aa   : > { %v4342_v53 = vpop.f32.mrf.mxu1 }
 0x7ac   : > { %v836_v54 = vpop.f32.mrf.mxu1 }
 0x7ae   : > { %v4343_v55 = vpop.f32.mrf.mxu1 }
 0x815   : > { %v898_v56 = vpop.xlane.xlu1 %897 }
 0x816   : > { %4650 = vrcp.f32 %v898_v56 }
 0x819   : > { %v1003_v59 = vpop.permute.xlu1 %1002 }
 0x81a   : > { %v1008_v61 = vsel %vm363_vm2, %v1003_v59, 0 }
 0x823   : > { %v4651_v57 = vpop.eup %4650 }
 0x824   : > { %v900_v58 = vmul.f32 %v4651_v57, %v4649_v49 }
 0x826   : > { %v901_v60 = vpack.c.bf16 %v900_v58, %v900_v58 }
 0x828   : > { %4353 = vmatmul.mubr.msk.bf16.vlgmr.msra.gmra.mxu1 %vm410_vm3, %v901_v60 }
 0x829   : > { %4363 = vmatpush3.bf16.xpose.msra.mxu1 %v1008_v61  ;;  %4364 = vmatprep.mubr.msk.bf16.mxu1 %vm4736_vm0, %v4735_v1 }
 0x82a   : > { %4374 = vmatprep.subr.bf16.mxu1 %v4735_v1 }
 0x830   : > { %4365 = vmatmul.mubr.msk.bf16.vlgmr.msra.gmra.mxu1 %vm363_vm2, %v1001_v62 }
 0x831   : > { %4376 = vmatprep.mubr.msk.bf16.mxu1 %vm4736_vm0, %v4735_v1  ;;  %4375 = vmatpush3.bf16.msra.mxu1 %v1117_v33  ;;  %v1437_v33 = vsel %vm590_vm5, %v3870_v32, 0 }
 0x832   : > { %4386 = vmatprep.subr.bf16.mxu1 %v4735_v1 }
 0x8e8   : > { %v944_v2 = vpop.f32.mrf.mxu1 }
 0x8e9   : > { %v950_v3 = vpack.c.bf16 %v944_v2, %v944_v2 }
 0x8ea   : > { %v4354_v4 = vpop.f32.mrf.mxu1 }
 0x8eb   : > { %4359 = vmatmul.mubr.msk.bf16.vlgmr.msra.gmra.mxu0 %vm363_vm2, %v950_v3 }
 0x8ec   : > { %v947_v5 = vpop.f32.mrf.mxu1  ;;  %4370 = vmatprep.mubr.msk.bf16.mxu0 %vm4736_vm0, %v4735_v1 }
 0x8ee   : > { %v4355_v6 = vpop.f32.mrf.mxu1 }
 0x8f0   : > { %v1044_v7 = vpop.f32.mrf.mxu1 }
 0x8f1   : > { %v1050_v8 = vsel %vm410_vm3, %v1044_v7, -inf }
 0x8f2   : > { %1051 = vmax.xlane.f32.xlu1 %v1050_v8  ;;  %v4366_v10 = vpop.f32.mrf.mxu1 }
 0x8f4   : > { %v1047_v11 = vpop.f32.mrf.mxu1 }
 0x8f6   : > { %v4367_v12 = vpop.f32.mrf.mxu1 }
 0x903   : > { %1162 = vrot.lane.b32.xlu1 %v4881_v9, %s4750_s20  ;;  %s4758_s20 = smov 40  }
 0x907   : > { %1160 = vrot.lane.b32.xlu1 %v4881_v9, %s4751_s22  ;;  %s286_s22 = scalar_lea.vmem %s5717_s1, %s4865_s17 }
 0x97b   : > { %v1052_v13 = vpop.xlane.xlu1 %1051 }
 0x97c   : > { %v1053_v14 = vsub.f32 %v1044_v7, %v1052_v13 }
 0x97e   : > { %v1054_v15 = vmul.f32 1.442695, %v1053_v14 }
 0x97f   : > { %v1163_v28 = vpop.permute.xlu1 %1162 }
 0x980   : > { %4652 = vpow2.f32 %v1054_v15  ;;  %v1168_v30 = vsel %vm363_vm2, %v1163_v28, 0 }
 0x983   : > { %v1161_v31 = vpop.permute.xlu1 %1160 }
 0x98d   : > { %v4653_v16 = vpop.eup %4652 }
 0x98e   : > { %v1056_v17 = vsel %vm410_vm3, %v4653_v16, 0.0 }
 0x98f   : > { %1057 = vadd.xlane.f32.xlu0 %v1056_v17 }
 0x9a5   : > { %1062 = vrot.lane.b32.xlu0 %v4881_v9, %s4752_s23  ;;  %s278_s23 = sand.u32 1, %s4725_s25  }
 0x9a6   : > { %s279_s8 = scalar_lea.vmem [#allocation2], %s278_s23  ;;  %s3761_s17 = scalar_lea.sflag [#allocation3], %s278_s23 }
 0x9ab   : > { %v993_v18 = vpop.f32.mrf.mxu0 }
 0x9ac   : > { %v999_v19 = vadd.f32 %v993_v18, %v839_v52 }
 0x9ad   : > { %v4360_v20 = vpop.f32.mrf.mxu0 }
 0x9af   : > { %v996_v21 = vpop.f32.mrf.mxu0 }
 0x9b1   : > { %v4361_v22 = vpop.f32.mrf.mxu0 }
 0xa18   : > { %v1058_v23 = vpop.xlane.xlu0 %1057 }
 0xa19   : > { %4654 = vrcp.f32 %v1058_v23 }
 0xa1c   : > { %v1063_v24 = vpop.permute.xlu0 %1062 }
 0xa1d   : > { %v1068_v25 = vsel %vm428_vm4, %v1063_v24, 0 }
 0xa1e   : > { %4369 = vmatpush3.bf16.msra.mxu0 %v1068_v25 }
 0xa1f   : > { %4380 = vmatprep.subr.bf16.mxu0 %v4735_v1 }
 0xa26   : > { %v4655_v26 = vpop.eup %4654 }
 0xa27   : > { %v1060_v27 = vmul.f32 %v4655_v26, %v4653_v16 }
 0xa29   : > { %v1061_v29 = vpack.c.bf16 %v1060_v27, %v1060_v27 }
 0xa2b   : > { %4371 = vmatmul.mubr.msk.bf16.vlgmr.msra.gmra.mxu0 %vm410_vm3, %v1061_v29 }
 0xa2c   : > { %4381 = vmatpush3.bf16.xpose.msra.mxu0 %v1168_v30  ;;  %4382 = vmatprep.mubr.msk.bf16.mxu0 %vm4736_vm0, %v4735_v1 }
 0xa2d   : > { %4392 = vmatprep.subr.bf16.mxu0 %v4735_v1 }
 0xa33   : > { %4383 = vmatmul.mubr.msk.bf16.vlgmr.msra.gmra.mxu0 %vm363_vm2, %v1161_v31 }
 0xa34   : > { %4394 = vmatprep.mubr.msk.bf16.mxu0 %vm4736_vm0, %v4735_v1  ;;  %4393 = vmatpush3.bf16.msra.mxu0 %v1277_v0 }
 0xa35   : > { %4404 = vmatprep.subr.bf16.mxu0 %v4735_v1 }
 0xaeb   : > { %v1104_v34 = vpop.f32.mrf.mxu0 }
 0xaec   : > { %v1110_v35 = vpack.c.bf16 %v1104_v34, %v1104_v34 }
 0xaed   : > { %v4372_v36 = vpop.f32.mrf.mxu0 }
 0xaee   : > { %4377 = vmatmul.mubr.msk.bf16.vlgmr.msra.gmra.mxu1 %vm363_vm2, %v1110_v35 }
 0xaef   : > { %v1107_v37 = vpop.f32.mrf.mxu0  ;;  %4388 = vmatprep.mubr.msk.bf16.mxu1 %vm4736_vm0, %v4735_v1 }
 0xaf1   : > { %v4373_v38 = vpop.f32.mrf.mxu0 }
 0xaf3   : > { %v1204_v39 = vpop.f32.mrf.mxu0 }
 0xaf4   : > { %v1210_v40 = vsel %vm410_vm3, %v1204_v39, -inf }
 0xaf5   : > { %1211 = vmax.xlane.f32.xlu0 %v1210_v40  ;;  %v4384_v41 = vpop.f32.mrf.mxu0 }
 0xaf7   : > { %v1207_v42 = vpop.f32.mrf.mxu0 }
 0xaf9   : > { %v4385_v43 = vpop.f32.mrf.mxu0 }
 0xb0b   : > { %1222 = vrot.lane.b32.xlu0 %v4881_v9, %s4753_s9  ;;  %s3773_s9 = sshll.u32 %s279_s8, 4  ;;  %s3774_s9 = int_to_ptr.vmem [resolvable:$true] %s3773_s9 }
 0xb0c   : > { %s4673_s16 = scalar_lea.vmem %s3774_s9, 16 }
 0xb0d   : > { %p4674_p11 = scmp.ne.s32.totalorder %s3774_s9, %s4673_s16 }
 0xb0f   : > { %1320 = vrot.lane.b32.xlu0 %v4881_v9, %s4754_s13  ;;  %p4675_p12 = pnand %p4674_p11, %p4840_p5 }
 0xb11   : > { %p4676_p13 = pneg %p4675_p12 }
 0xb7e   : > { %v1212_v44 = vpop.xlane.xlu0 %1211 }
 0xb7f   : > { %v1213_v45 = vsub.f32 %v1204_v39, %v1212_v44 }
 0xb81   : > { %v1214_v46 = vmul.f32 1.442695, %v1213_v45 }
 0xb82   : > { %v1223_v47 = vpop.permute.xlu0 %1222 }
 0xb83   : > { %4656 = vpow2.f32 %v1214_v46  ;;  %v1228_v48 = vsel %vm428_vm4, %v1223_v47, 0 }
 0xb84   : > { %4387 = vmatpush3.bf16.msra.mxu1 %v1228_v48 }
 0xb85   : > { %4398 = vmatprep.subr.bf16.mxu1 %v4735_v1 }
 0xb86   : > { %v1321_v62 = vpop.permute.xlu0 %1320 }
 0xb90   : > { %v4657_v49 = vpop.eup %4656 }
 0xb91   : > { %v1216_v50 = vsel %vm410_vm3, %v4657_v49, 0.0 }
 0xb92   : > { %1217 = vadd.xlane.f32.xlu1 %v1216_v50 }
 0xba3   : > { %1322 = vrot.lane.b32.xlu1 %v4881_v9, %s4755_s14 }
 0xbae   : > { %v1153_v51 = vpop.f32.mrf.mxu1 }
 0xbaf   : > { %v1159_v52 = vadd.f32 %v1153_v51, %v999_v19 }
 0xbb0   : > { %v4378_v53 = vpop.f32.mrf.mxu1 }
 0xbb2   : > { %v1156_v54 = vpop.f32.mrf.mxu1 }
 0xbb4   : > { %v4379_v55 = vpop.f32.mrf.mxu1 }
 0xc1b   : > { %v1218_v56 = vpop.xlane.xlu1 %1217 }
 0xc1c   : > { %4658 = vrcp.f32 %v1218_v56 }
 0xc1f   : > { %v1323_v59 = vpop.permute.xlu1 %1322 }
 0xc20   : > { %v1328_v61 = vsel %vm363_vm2, %v1323_v59, 0  ;;  %v3874_v59 = vld [vmem:[%s5719_s3 + $0xe] sm:$0x3] }
 0xc29   : > { %v4659_v57 = vpop.eup %4658 }
 0xc2a   : > { %v1220_v58 = vmul.f32 %v4659_v57, %v4657_v49 }
 0xc2c   : > { %v1221_v60 = vpack.c.bf16 %v1220_v58, %v1220_v58 }
 0xc2e   : > { %4389 = vmatmul.mubr.msk.bf16.vlgmr.msra.gmra.mxu1 %vm410_vm3, %v1221_v60  ;;  %v1597_v60 = vsel %vm590_vm5, %v3874_v59, 0 }
 0xc2f   : > { %4399 = vmatpush3.bf16.xpose.msra.mxu1 %v1328_v61  ;;  %4400 = vmatprep.mubr.msk.bf16.mxu1 %vm4736_vm0, %v4735_v1 }
 0xc30   : > { %4410 = vmatprep.subr.bf16.mxu1 %v4735_v1 }
 0xc36   : > { %4401 = vmatmul.mubr.msk.bf16.vlgmr.msra.gmra.mxu1 %vm363_vm2, %v1321_v62 }
 0xc37   : > { %4412 = vmatprep.mubr.msk.bf16.mxu1 %vm4736_vm0, %v4735_v1  ;;  %4411 = vmatpush3.bf16.msra.mxu1 %v1437_v33 }
 0xc38   : > { %4422 = vmatprep.subr.bf16.mxu1 %v4735_v1 }
 0xcee   : > { %v1264_v2 = vpop.f32.mrf.mxu1 }
 0xcef   : > { %v1270_v3 = vpack.c.bf16 %v1264_v2, %v1264_v2 }
 0xcf0   : > { %v4390_v4 = vpop.f32.mrf.mxu1 }
 0xcf1   : > { %4395 = vmatmul.mubr.msk.bf16.vlgmr.msra.gmra.mxu0 %vm363_vm2, %v1270_v3  ;;  %v290_v3 = vld [vmem:[%s5722_s6 + $0x1] ss:$0 sm:$0xff] }
 0xcf2   : > { %v1267_v5 = vpop.f32.mrf.mxu1  ;;  %4406 = vmatprep.mubr.msk.bf16.mxu0 %vm4736_vm0, %v4735_v1 }
 0xcf4   : > { %v4391_v6 = vpop.f32.mrf.mxu1 }
 0xcf6   : > { %v1364_v7 = vpop.f32.mrf.mxu1 }
 0xcf7   : > { %v1370_v8 = vsel %vm410_vm3, %v1364_v7, -inf }
 0xcf8   : > { %1371 = vmax.xlane.f32.xlu1 %v1370_v8  ;;  %v4402_v10 = vpop.f32.mrf.mxu1 }
 0xcf9   : > { %v4672_v10 = vld [vmem:[%s4871_s21] sm:$0xff] }
 0xcfa   : > { %v1367_v11 = vpop.f32.mrf.mxu1 }
 0xcfc   : > { %v4403_v12 = vpop.f32.mrf.mxu1 }
 0xd09   : > { %1482 = vrot.lane.b32.xlu1 %v4881_v9, %s4756_s18  ;;  %s4761_s18 = smov [#allocation2]  }
 0xd0d   : > { %1480 = vrot.lane.b32.xlu1 %v4881_v9, %s4757_s19  ;;  %s4677_s19 = sshll.u32 %s4761_s18, 4  ;;  %s4678_s19 = int_to_ptr.vmem [resolvable:$false] %s4677_s19 }
 0xd0e   : > { %p4680_p0 = scmp.lt.s32.totalorder %s3774_s9, %s4678_s19 }
 0xd81   : > { %v1372_v13 = vpop.xlane.xlu1 %1371 }
 0xd82   : > { %v1373_v14 = vsub.f32 %v1364_v7, %v1372_v13 }
 0xd84   : > { %v1374_v15 = vmul.f32 1.442695, %v1373_v14 }
 0xd85   : > { %v1483_v28 = vpop.permute.xlu1 %1482 }
 0xd86   : > { %4660 = vpow2.f32 %v1374_v15  ;;  %v1488_v30 = vsel %vm363_vm2, %v1483_v28, 0  ;;  %v1661_v28 = vld [vmem:[%s5720_s4 + $0x40] sm:$0xff] }
 0xd89   : > { %v1481_v31 = vpop.permute.xlu1 %1480 }
 0xd93   : > { %v4661_v16 = vpop.eup %4660 }
 0xd94   : > { %v1376_v17 = vsel %vm410_vm3, %v4661_v16, 0.0 }
 0xd95   : > { %1377 = vadd.xlane.f32.xlu0 %v1376_v17 }
 0xdab   : > { %1382 = vrot.lane.b32.xlu0 %v4881_v9, %s4758_s20 }
 0xdb1   : > { %v1313_v18 = vpop.f32.mrf.mxu0 }
 0xdb2   : > { %v1319_v19 = vadd.f32 %v1313_v18, %v1159_v52 }
 0xdb3   : > { %v4396_v20 = vpop.f32.mrf.mxu0 }
 0xdb4   : > { %v1665_v20 = vld [vmem:[%s5720_s4 + $0xc0] sm:$0xff] }
 0xdb5   : > { %v1316_v21 = vpop.f32.mrf.mxu0 }
 0xdb6   : > { %v1664_v21 = vld [vmem:[%s5720_s4 + $0x88] sm:$0xff] }
 0xdb7   : > { %v4397_v22 = vpop.f32.mrf.mxu0 }
 0xe1e   : > { %v1378_v23 = vpop.xlane.xlu0 %1377 }
 0xe1f   : > { %4662 = vrcp.f32 %v1378_v23  ;;  %v1666_v23 = vld [vmem:[%s5720_s4 + $0xc8] sm:$0xff] }
 0xe22   : > { %v1383_v24 = vpop.permute.xlu0 %1382 }
 0xe23   : > { %v1388_v25 = vsel %vm428_vm4, %v1383_v24, 0 }
 0xe24   : > { %4405 = vmatpush3.bf16.msra.mxu0 %v1388_v25  ;;  %v3883_v25 = vcombine.low %v1664_v21, %v1666_v23 }
 0xe25   : > { %4416 = vmatprep.subr.bf16.mxu0 %v4735_v1 }
 0xe2c   : > { %v4663_v26 = vpop.eup %4662 }
 0xe2d   : > { %v1380_v27 = vmul.f32 %v4663_v26, %v4661_v16  ;;  %v3884_v26 = vcombine.high %v1664_v21, %v1666_v23  ;;  %v4530_v21 = vld [vmem:[%s5721_s5 + $0x110] sm:$0xff]   ;;  %v4532_v23 = vld [vmem:[%s5721_s5 + $0x148] sm:$0xff]  }
 0xe2f   : > { %v1381_v29 = vpack.c.bf16 %v1380_v27, %v1380_v27  ;;  %v1659_v27 = vld [vmem:[%s5720_s4] sm:$0xff] }
 0xe30   : > { %v3877_v32 = vcombine.low %v1659_v27, %v1661_v28 }
 0xe31   : > { %4407 = vmatmul.mubr.msk.bf16.vlgmr.msra.gmra.mxu0 %vm410_vm3, %v1381_v29  ;;  %v1660_v29 = vld [vmem:[%s5720_s4 + $0x8] sm:$0xff] }
 0xe32   : > { %4417 = vmatpush3.bf16.xpose.msra.mxu0 %v1488_v30  ;;  %4418 = vmatprep.mubr.msk.bf16.mxu0 %vm4736_vm0, %v4735_v1  ;;  %v3878_v30 = vcombine.high %v1659_v27, %v1661_v28  ;;  %v4536_v27 = vld [vmem:[%s5721_s5 + $0x140] sm:$0xff]  }
 0xe33   : > { %4428 = vmatprep.subr.bf16.mxu0 %v4735_v1  ;;  %v4537_v28 = vld [vmem:[%s5721_s5 + $0x1c0] sm:$0xff]  }
 0xe39   : > { %4419 = vmatmul.mubr.msk.bf16.vlgmr.msra.gmra.mxu0 %vm363_vm2, %v1481_v31  ;;  %v1662_v31 = vld [vmem:[%s5720_s4 + $0x48] sm:$0xff] }
 0xe3a   : > { %4430 = vmatprep.mubr.msk.bf16.mxu0 %vm4736_vm0, %v4735_v1  ;;  %4429 = vmatpush3.bf16.msra.mxu0 %v1597_v60  ;;  %v3879_v33 = vcombine.low %v1660_v29, %v1662_v31 }
 0xe3b   : > { %1786 = vmatprep.subr.bf16.mxu0 %v3884_v26  ;;  %v4535_v26 = vld [vmem:[%s5721_s5 + $0x188] sm:$0xff]  }
 0xef1   : > { %v1424_v34 = vpop.f32.mrf.mxu0 }
 0xef2   : > { %v1430_v35 = vpack.c.bf16 %v1424_v34, %v1424_v34  ;;  %v3880_v34 = vcombine.high %v1660_v29, %v1662_v31  ;;  %v4538_v29 = vld [vmem:[%s5721_s5 + $0x100] sm:$0xff]   ;;  %v4540_v31 = vld [vmem:[%s5721_s5 + $0x78] sm:$0xff]  }
 0xef3   : > { %v4408_v36 = vpop.f32.mrf.mxu0 }
 0xef4   : > { %4413 = vmatmul.mubr.msk.bf16.vlgmr.msra.gmra.mxu1 %vm363_vm2, %v1430_v35  ;;  %v1891_v35 = vld [vmem:[%s5720_s4 + $0x90] sm:$0xff] }
 0xef5   : > { %v1427_v37 = vpop.f32.mrf.mxu0  ;;  %4424 = vmatprep.mubr.msk.bf16.mxu1 %vm4736_vm0, %v4735_v1  ;;  %v1893_v36 = vld [vmem:[%s5720_s4 + $0xd0] sm:$0xff] }
 0xef6   : > { %v1892_v37 = vld [vmem:[%s5720_s4 + $0x98] sm:$0xff] }
 0xef7   : > { %v4409_v38 = vpop.f32.mrf.mxu0 }
 0xef8   : > { %v4760_v38 = vmov 0  }
 0xef9   : > { %v1524_v39 = vpop.f32.mrf.mxu0  ;;  %4504 = vset.pattern.permute.xlu1 %v4760_v38  ;;  %4505 = vset.pattern.permute.xlu0 %v4760_v38 }
 0xefa   : > { %v1530_v40 = vsel %vm410_vm3, %v1524_v39, -inf }
 0xefb   : > { %1531 = vmax.xlane.f32.xlu0 %v1530_v40  ;;  %v4420_v41 = vpop.f32.mrf.mxu0  ;;  %v1894_v40 = vld [vmem:[%s5720_s4 + $0xd8] sm:$0xff] }
 0xefc   : > { %v3892_v41 = vcombine.low %v1891_v35, %v1893_v36 }
 0xefd   : > { %v1527_v42 = vpop.f32.mrf.mxu0 }
 0xefe   : > { %v3894_v42 = vcombine.low %v1892_v37, %v1894_v40 }
 0xeff   : > { %v4421_v43 = vpop.f32.mrf.mxu0 }
 0xf00   : > { %v3895_v43 = vcombine.high %v1892_v37, %v1894_v40 }
 0xf11   : > { %1542 = vrot.lane.b32.xlu0 %v4881_v9, %s4759_s29  ;;  %s4050_s29 = sshll.u32 %s4823_s28, 4  ;;  %s4679_s28 = scalar_lea.vmem %s4678_s19, 32 }
 0xf12   : > { %s3771_s15 = scalar_lea.hbm %s5723_s7, %s4050_s29  ;;  %p4681_p1 = scmp.lt.s32.totalorder %s4679_s28, %s4673_s16 }
 0xf14   : > { %p4682_p2 = por %p4681_p1, %p4680_p0 }
 0xf16   : > { %p4683_p3 = pnand %p4682_p2, %p4676_p13 }
 0xf84   : > { %v1532_v44 = vpop.xlane.xlu0 %1531 }
 0xf85   : > { %v1533_v45 = vsub.f32 %v1524_v39, %v1532_v44  ;;  %v3893_v39 = vcombine.high %v1891_v35, %v1893_v36 }
 0xf87   : > { %v1534_v46 = vmul.f32 1.442695, %v1533_v45 }
 0xf88   : > { %v1543_v47 = vpop.permute.xlu0 %1542 }
 0xf89   : > { %4664 = vpow2.f32 %v1534_v46  ;;  %v1548_v48 = vsel %vm428_vm4, %v1543_v47, 0 }
 0xf8a   : > { %4423 = vmatpush3.bf16.msra.mxu1 %v1548_v48  ;;  %v291_v48 = vld [vmem:[%s5722_s6 + $0x2] ss:$0 sm:$0xff] }
 0xf96   : > { %v4665_v49 = vpop.eup %4664 }
 0xf97   : > { %v1536_v50 = vsel %vm410_vm3, %v4665_v49, 0.0 }
 0xf98   : > { %1537 = vadd.xlane.f32.xlu1 %v1536_v50  ;;  %v292_v50 = vld [vmem:[%s5722_s6 + $0x3] ss:$0 sm:$0xff] }
 0xfb4   : > { %v1473_v51 = vpop.f32.mrf.mxu1 }
 0xfb5   : > { %v1479_v52 = vadd.f32 %v1473_v51, %v1319_v19  ;;  %v1663_v19 = vld [vmem:[%s5720_s4 + $0x80] sm:$0xff] }
 0xfb6   : > { %v4414_v53 = vpop.f32.mrf.mxu1  ;;  %v3882_v22 = vcombine.high %v1663_v19, %v1665_v20  ;;  %v3881_v24 = vcombine.low %v1663_v19, %v1665_v20  ;;  %v4528_v19 = vld [vmem:[%s5721_s5 + $0x150] sm:$0xff]  }
 0xfb7   : > { %v1889_v53 = vld [vmem:[%s5720_s4 + $0x50] sm:$0xff] }
 0xfb8   : > { %v1476_v54 = vpop.f32.mrf.mxu1  ;;  %1745 = vmatprep.subr.bf16.mxu1 %v3882_v22  ;;  %v4529_v20 = vld [vmem:[%s5721_s5 + $0x1d0] sm:$0xff]  }
 0xfb9   : > { %v1888_v54 = vld [vmem:[%s5720_s4 + $0x18] sm:$0xff]  ;;  %v4531_v22 = vld [vmem:[%s5721_s5 + $0x190] sm:$0xff]  }
 0xfba   : > { %v4415_v55 = vpop.f32.mrf.mxu1 }
 0xfbb   : > { %v1890_v55 = vld [vmem:[%s5720_s4 + $0x58] sm:$0xff] }
 0xfbc   : > { %v3890_v60 = vcombine.low %v1888_v54, %v1890_v55 }
0x1021   : > { %v1538_v56 = vpop.xlane.xlu1 %1537 }
0x1022   : > { %4666 = vrcp.f32 %v1538_v56 }
0x102f   : > { %v4667_v9 = vpop.eup %4666 }
0x1030   : > { %v1540_v57 = vmul.f32 %v4667_v9, %v4665_v49 }
0x1032   : > { %v1541_v58 = vpack.c.bf16 %v1540_v57, %v1540_v57 }
0x1034   : > { %4425 = vmatmul.mubr.msk.bf16.vlgmr.msra.gmra.mxu1 %vm410_vm3, %v1541_v58  ;;  %v3891_v58 = vcombine.high %v1888_v54, %v1890_v55 }
0x1035   : > { %1746 = vmatpush1.bf16.msra.mxu1 %v3881_v24  ;;  %1765 = vmatprep.mubr.bf16.mxu1 %v4760_v38  ;;  %v4533_v24 = vld [vmem:[%s5721_s5 + $0x1c8] sm:$0xff]  }
0x1036   : > { %1747 = vmatprep.subr.bf16.mxu1 %v3878_v30  ;;  %v4539_v30 = vld [vmem:[%s5721_s5 + $0x180] sm:$0xff]  }
0x1039   : > { %1748 = vmatpush1.bf16.msra.mxu1 %v3877_v32  ;;  %v4541_v32 = vld [vmem:[%s5721_s5 + $0xf8] sm:$0xff]  }
0x103a   : > { %1970 = vmatprep.subr.bf16.mxu1 %v3893_v39 }
0x10f4   : > { %v1584_v61 = vpop.f32.mrf.mxu1 }
0x10f5   : > { %v1590_v62 = vpack.c.bf16 %v1584_v61, %v1584_v61  ;;  %v4508_v61 = vld [vmem:[%s5721_s5 + $0x178] sm:$0xff]  }
0x10f6   : > { %v4426_v63 = vpop.f32.mrf.mxu1 }
0x10f7   : > { %4431 = vmatmul.mubr.msk.bf16.vlgmr.msra.gmra.mxu0 %vm363_vm2, %v1590_v62  ;;  %v4509_v62 = vld [vmem:[%s5721_s5 + $0x1f8] sm:$0xff]  }
0x10f8   : > { %v1587_v0 = vpop.f32.mrf.mxu1  ;;  %1787 = vmatpush1.bf16.msra.mxu0 %v3883_v25  ;;  %1806 = vmatprep.mubr.bf16.mxu0 %v4760_v38  ;;  %v4510_v63 = vld [vmem:[%s5721_s5 + $0x138] sm:$0xff]   ;;  %v4534_v25 = vld [vmem:[%s5721_s5 + $0x108] sm:$0xff]  }
0x10f9   : > { %1788 = vmatprep.subr.bf16.mxu0 %v3880_v34  ;;  %v4511_v0 = vld [vmem:[%s5721_s5 + $0x1b8] sm:$0xff]  }
0x10fa   : > { %v4427_v2 = vpop.f32.mrf.mxu1 }
0x10fb   : > { %v4512_v2 = vld [vmem:[%s5721_s5 + $0x170] sm:$0xff]  }
0x10fc   : > { %1789 = vmatpush1.bf16.msra.mxu0 %v3879_v33  ;;  %v1670_v33 = vlaneseq }
0x10fd   : > { %2011 = vmatprep.subr.bf16.mxu0 %v3895_v43 }
0x10fe   : > { %v1671_v34 = vshrl.u32 %v1670_v33, 7  ;;  %v4554_v33 = vld [vmem:[%s5721_s5 + $0x20] sm:$0xff]  }
0x1100   : > { %v5250_v37 = vsub.s32 1, %v1671_v34  ;;  %v5252_v40 = vsub.s32 3, %v1671_v34  ;;  %v5257_v43 = vsub.s32 0, %v1671_v34 }
0x11b7   : > { %v1633_v4 = vpop.f32.mrf.mxu0 }
0x11b8   : > { %v1639_v5 = vadd.f32 %v1633_v4, %v1479_v52  ;;  %v1887_v52 = vld [vmem:[%s5720_s4 + $0x10] sm:$0xff] }
0x11b9   : > { %v4432_v6 = vpop.f32.mrf.mxu0  ;;  %v3889_v57 = vcombine.high %v1887_v52, %v1889_v53  ;;  %v3888_v59 = vcombine.low %v1887_v52, %v1889_v53  ;;  %v4514_v4 = vld [vmem:[%s5721_s5 + $0x130] sm:$0xff]  }
0x11ba   : > { %v1640_v7 = vadd.f32 %v1639_v5, %v290_v3  ;;  %v4513_v3 = vld [vmem:[%s5721_s5 + $0x1f0] sm:$0xff]   ;;  %v4516_v6 = vld [vmem:[%s5721_s5 + $0x168] sm:$0xff]  }
0x11bb   : > { %v1636_v8 = vpop.f32.mrf.mxu0  ;;  %v4515_v5 = vld [vmem:[%s5721_s5 + $0x1b0] sm:$0xff]  }
0x11bc   : > { %v1641_v11 = vadd.f32 %v4672_v10, %v1640_v7  ;;  %v4517_v7 = vld [vmem:[%s5721_s5 + $0x1e8] sm:$0xff]  }
0x11bd   : > { %v4433_v12 = vpop.f32.mrf.mxu0  ;;  %v4518_v8 = vld [vmem:[%s5721_s5 + $0x128] sm:$0xff]  }
0x11be   : > { %v1642_v13 = vsel %vm315_vm1, %v1641_v11, 0.0  ;;  %v4519_v10 = vld [vmem:[%s5721_s5 + $0x1a8] sm:$0xff]   ;;  %v4521_v12 = vld [vmem:[%s5721_s5 + $0x1e0] sm:$0xff]  }
0x11bf   : > { %1643 = vadd.xlane.f32.xlu1 %v1642_v13  ;;  %v4522_v13 = vld [vmem:[%s5721_s5 + $0x120] sm:$0xff]  }
0x1248   : > { %v1644_v14 = vpop.xlane.xlu1 %1643 }
0x1249   : > { %v1646_v15 = vmul.f32 0.03125, %v1644_v14  ;;  %v4523_v14 = vld [vmem:[%s5721_s5 + $0x1a0] sm:$0xff]  }
0x124b   : > { %v1647_v16 = vsub.f32 %v1641_v11, %v1646_v15  ;;  %v4520_v11 = vld [vmem:[%s5721_s5 + $0x160] sm:$0xff]   ;;  %v4524_v15 = vld [vmem:[%s5721_s5 + $0x158] sm:$0xff]  }
0x124d   : > { %v1648_v17 = vmul.f32 %v1647_v16, %v1647_v16 }
0x124f   : > { %v1649_v18 = vsel %vm315_vm1, %v1648_v17, 0.0  ;;  %v4526_v17 = vld [vmem:[%s5721_s5 + $0x118] sm:$0xff]  }
0x1250   : > { %1650 = vadd.xlane.f32.xlu1 %v1649_v18  ;;  %v4527_v18 = vld [vmem:[%s5721_s5 + $0x198] sm:$0xff]  }
0x12d9   : > { %v1651_v44 = vpop.xlane.xlu1 %1650 }
0x12da   : > { %v1652_v45 = vmul.f32 0.03125, %v1651_v44  ;;  %v5259_v44 = vsub.s32 2, %v1671_v34  ;;  %v4555_v34 = vld [vmem:[%s5721_s5 + $0xa0] sm:$0xff]  }
0x12dc   : > { %v1653_v46 = vadd.f32 1e-05, %v1652_v45 }
0x12de   : > { %4668 = vrsqrt.f32 %v1653_v46 }
0x12eb   : > { %v4669_v47 = vpop.eup %4668 }
0x12ec   : > { %v1655_v49 = vmul.f32 %v4669_v47, %v1647_v16  ;;  %v4525_v16 = vld [vmem:[%s5721_s5 + $0x1d8] sm:$0xff]  }
0x12ed   : > { %v5264_v47 = vld [vmem:[%s5722_s6 + $0x4] ss:$8 sm:$0xf] }
0x12ee   : > { %v1656_v51 = vmul.f32 %v1655_v49, %v291_v48 }
0x12f0   : > { %v5128_v56 = vadd.f32 %v1656_v51, %v292_v50  ;;  %v1677_v50 = vrot.slane %v5264_v47, %v5250_v37  ;;  %v1685_v51 = vrot.slane %v5264_v47, %v5252_v40 }
0x12f2   : > { %v5132_v9 = vpack.c.bf16 %v5128_v56, %v5128_v56 }
0x12f4   : > { %3885 = vmatmul.mubr.msk.bf16.vlgmr.msra.gmra.mxu1 %vm315_vm1, %v5132_v9  ;;  %3886 = vmatmul.mubr.msk.bf16.vlgmr.msra.gmra.mxu0 %vm315_vm1, %v5132_v9 }
0x12f5   : > { %1971 = vmatpush1.bf16.msra.mxu1 %v3892_v41  ;;  %2012 = vmatpush1.bf16.msra.mxu0 %v3894_v42  ;;  %v3887_v42 = vld [vmem:[%s5722_s6 + $0x24] ss:$8 sm:$0xf] }
0x12f6   : > { %1972 = vmatprep.subr.bf16.mxu1 %v3889_v57  ;;  %2013 = vmatprep.subr.bf16.mxu0 %v3891_v58  ;;  %v1901_v48 = vrot.slane %v3887_v42, %v5257_v43  ;;  %v1909_v49 = vrot.slane %v3887_v42, %v5259_v44  ;;  %v1905_v54 = vrot.slane %v3887_v42, %v5250_v37 }
0x12f7   : > { %1990 = vmatprep.mubr.bf16.mxu1 %v4760_v38  ;;  %2031 = vmatprep.mubr.bf16.mxu0 %v4760_v38  ;;  %v1913_v55 = vrot.slane %v3887_v42, %v5252_v40  ;;  %v4558_v42 = vld [vmem:[%s5721_s5 + $0x18] sm:$0xff]  }
0x12f9   : > { %1973 = vmatpush1.bf16.msra.mxu1 %v3888_v59  ;;  %2014 = vmatpush1.bf16.msra.mxu0 %v3890_v60 }
0x12fa   : > { %4104 = vmatprep.subr.bf16.mxu1 %v4508_v61  ;;  %4126 = vmatprep.subr.bf16.mxu0 %v4509_v62 }
0x12fc   : > { %3896 = vmatmul.mubr.msk.bf16.vlgmr.msra.gmra.mxu1 %vm315_vm1, %v5132_v9  ;;  %3897 = vmatmul.mubr.msk.bf16.vlgmr.msra.gmra.mxu0 %vm315_vm1, %v5132_v9 }
0x12fd   : > { %4105 = vmatpush3.bf16.msra.mxu1 %v4510_v63  ;;  %4127 = vmatpush3.bf16.msra.mxu0 %v4511_v0 }
0x12fe   : > { %4106 = vmatprep.subr.bf16.mxu1 %v4512_v2  ;;  %4128 = vmatprep.subr.bf16.mxu0 %v4513_v3 }
0x1301   : > { %4107 = vmatpush3.bf16.msra.mxu1 %v4514_v4  ;;  %4129 = vmatpush3.bf16.msra.mxu0 %v4515_v5 }
0x1302   : > { %4108 = vmatprep.subr.bf16.mxu1 %v4516_v6  ;;  %4130 = vmatprep.subr.bf16.mxu0 %v4517_v7 }
0x1305   : > { %4109 = vmatpush3.bf16.msra.mxu1 %v4518_v8  ;;  %4131 = vmatpush3.bf16.msra.mxu0 %v4519_v10 }
0x1306   : > { %4110 = vmatprep.subr.bf16.mxu1 %v4520_v11  ;;  %4132 = vmatprep.subr.bf16.mxu0 %v4521_v12 }
0x1309   : > { %4111 = vmatpush3.bf16.msra.mxu1 %v4522_v13  ;;  %4133 = vmatpush3.bf16.msra.mxu0 %v4523_v14 }
0x130a   : > { %4112 = vmatprep.subr.bf16.mxu1 %v4524_v15  ;;  %4134 = vmatprep.subr.bf16.mxu0 %v4525_v16 }
0x130d   : > { %4113 = vmatpush3.bf16.msra.mxu1 %v4526_v17  ;;  %4135 = vmatpush3.bf16.msra.mxu0 %v4527_v18  ;;  %v4542_v17 = vld [vmem:[%s5721_s5 + $0x38] sm:$0xff]  }
0x130e   : > { %4114 = vmatprep.subr.bf16.mxu1 %v4528_v19  ;;  %4136 = vmatprep.subr.bf16.mxu0 %v4529_v20  ;;  %v4543_v18 = vld [vmem:[%s5721_s5 + $0xb8] sm:$0xff]  }
0x1311   : > { %4115 = vmatpush3.bf16.msra.mxu1 %v4530_v21  ;;  %4137 = vmatpush3.bf16.msra.mxu0 %v4531_v22  ;;  %v4544_v21 = vld [vmem:[%s5721_s5 + $0x70] sm:$0xff]  }
0x1312   : > { %4116 = vmatprep.subr.bf16.mxu1 %v4532_v23  ;;  %4138 = vmatprep.subr.bf16.mxu0 %v4533_v24  ;;  %v4545_v22 = vld [vmem:[%s5721_s5 + $0xf0] sm:$0xff]  }
0x1315   : > { %4117 = vmatpush3.bf16.msra.mxu1 %v4534_v25  ;;  %4139 = vmatpush3.bf16.msra.mxu0 %v4535_v26  ;;  %v4546_v25 = vld [vmem:[%s5721_s5 + $0x30] sm:$0xff]  }
0x1316   : > { %4118 = vmatprep.subr.bf16.mxu1 %v4536_v27  ;;  %4140 = vmatprep.subr.bf16.mxu0 %v4537_v28  ;;  %v4547_v26 = vld [vmem:[%s5721_s5 + $0xb0] sm:$0xff]   ;;  %v4548_v27 = vld [vmem:[%s5721_s5 + $0x68] sm:$0xff]  }
0x1317   : > { %v4549_v28 = vld [vmem:[%s5721_s5 + $0xe8] sm:$0xff]  }
0x1319   : > { %4119 = vmatpush3.bf16.msra.mxu1 %v4538_v29  ;;  %4141 = vmatpush3.bf16.msra.mxu0 %v4539_v30  ;;  %v4550_v29 = vld [vmem:[%s5721_s5 + $0x28] sm:$0xff]  }
0x131a   : > { %4148 = vmatprep.subr.bf16.mxu1 %v4540_v31  ;;  %4170 = vmatprep.subr.bf16.mxu0 %v4541_v32  ;;  %v4551_v30 = vld [vmem:[%s5721_s5 + $0xa8] sm:$0xff]   ;;  %v4552_v31 = vld [vmem:[%s5721_s5 + $0x60] sm:$0xff]  }
0x131b   : > { %v4553_v32 = vld [vmem:[%s5721_s5 + $0xe0] sm:$0xff]  }
0x13b4   : > { %v5246_v35 = vpop.f32.mrf.mxu1  ;;  %v5248_v36 = vpop.f32.mrf.mxu0 }
0x13b6   : > { %v1769_v39 = vpop.f32.mrf.mxu1  ;;  %v1810_v41 = vpop.f32.mrf.mxu0 }
0x13b7   : > { %v1770_v61 = vadd.f32 %v1769_v39, %v1677_v50  ;;  %v1811_v62 = vadd.f32 %v1810_v41, %v1685_v51  ;;  %v4556_v39 = vld [vmem:[%s5721_s5 + $0x58] sm:$0xff]   ;;  %v4563_v50 = vld [vmem:[%s5721_s5 + $0x90] sm:$0xff]   ;;  %v1673_v51 = vrot.slane %v5264_v47, %v5257_v43 }
0x13b8   : > { %v1771_v45 = vpop.f32.mrf.mxu1  ;;  %v1812_v46 = vpop.f32.mrf.mxu0  ;;  %v4557_v41 = vld [vmem:[%s5721_s5 + $0xd8] sm:$0xff]  }
0x13b9   : > { %v1816_v11 = vmax.f32 %v1770_v61, 0.0  ;;  %v1818_v12 = vmax.f32 %v1811_v62, 0.0  ;;  %v4559_v45 = vld [vmem:[%s5721_s5 + $0x98] sm:$0xff]   ;;  %v4560_v46 = vld [vmem:[%s5721_s5 + $0x50] sm:$0xff]   ;;  %v2660_v61 = vld [vmem:[%s5720_s4 + $0xa0] sm:$0xff] }
0x13ba   : > { %v1772_v52 = vpop.f32.mrf.mxu1  ;;  %v1813_v53 = vpop.f32.mrf.mxu0  ;;  %v2663_v62 = vld [vmem:[%s5720_s4 + $0xe8] sm:$0xff] }
0x13bb   : > { %v1820_v23 = vpack.c.bf16 %v1816_v11, %v1816_v11  ;;  %v1822_v24 = vpack.c.bf16 %v1818_v12, %v1818_v12  ;;  %v1681_v52 = vrot.slane %v5264_v47, %v5259_v44  ;;  %v4564_v53 = vld [vmem:[%s5721_s5 + $0x48] sm:$0xff]  }
0x13bc   : > { %v1992_v57 = vpop.f32.mrf.mxu1  ;;  %v2033_v58 = vpop.f32.mrf.mxu0  ;;  %v4567_v47 = vld [vmem:[%s5721_s5 + $0x88] sm:$0xff]  }
0x13bd   : > { %v1993_v59 = vadd.f32 %v1992_v57, %v1901_v48  ;;  %v2034_v60 = vadd.f32 %v2033_v58, %v1909_v49  ;;  %v4561_v48 = vld [vmem:[%s5721_s5 + $0xd0] sm:$0xff]   ;;  %v1768_v57 = vadd.f32 %v5246_v35, %v1673_v51  ;;  %v1809_v58 = vadd.f32 %v5248_v36, %v1681_v52  ;;  %v2662_v35 = vld [vmem:[%s5720_s4 + $0xe0] sm:$0xff]  ;;  %v2661_v36 = vld [vmem:[%s5720_s4 + $0xa8] sm:$0xff] }
0x13be   : > { %v1994_v63 = vpop.f32.mrf.mxu1  ;;  %v2035_v0 = vpop.f32.mrf.mxu0  ;;  %v4562_v49 = vld [vmem:[%s5721_s5 + $0x10] sm:$0xff]   ;;  %v3967_v11 = vcombine.low %v2660_v61, %v2662_v35  ;;  %v3969_v12 = vcombine.low %v2661_v36, %v2663_v62  ;;  %v4596_v51 = vld [vmem:[%s5721_s5 + $0x248] sm:$0xff]  }
0x13bf   : > { %v1995_v2 = vadd.f32 %v1994_v63, %v1905_v54  ;;  %v2036_v3 = vadd.f32 %v2035_v0, %v1913_v55  ;;  %v2040_v4 = vmax.f32 %v1993_v59, 0.0  ;;  %v2042_v5 = vmax.f32 %v2034_v60, 0.0  ;;  %v4565_v54 = vld [vmem:[%s5721_s5 + $0xc8] sm:$0xff]   ;;  %v4568_v59 = vld [vmem:[%s5721_s5 + $0x40] sm:$0xff]  }
0x13c0   : > { %v1996_v6 = vpop.f32.mrf.mxu1  ;;  %v2037_v7 = vpop.f32.mrf.mxu0  ;;  %v4566_v55 = vld [vmem:[%s5721_s5 + $0x8] sm:$0xff]   ;;  %v4569_v60 = vld [vmem:[%s5721_s5 + $0xc0] sm:$0xff]  }
0x13c1   : > { %v2041_v8 = vmax.f32 %v1995_v2, 0.0  ;;  %v2043_v10 = vmax.f32 %v2036_v3, 0.0  ;;  %v2044_v19 = vpack.c.bf16 %v2040_v4, %v2040_v4  ;;  %v2046_v20 = vpack.c.bf16 %v2042_v5, %v2042_v5  ;;  %v4570_v63 = vld [vmem:[%s5721_s5] sm:$0xff]   ;;  %v4597_v52 = vld [vmem:[%s5721_s5 + $0x2c8] sm:$0xff]  }
0x13c2   : > { %v1997_v13 = vpop.f32.mrf.mxu1  ;;  %v2038_v14 = vpop.f32.mrf.mxu0  ;;  %v4571_v0 = vld [vmem:[%s5721_s5 + $0x80] sm:$0xff]   ;;  %v1815_v2 = vmax.f32 %v1768_v57, 0.0  ;;  %v1817_v3 = vmax.f32 %v1809_v58, 0.0  ;;  %v3968_v4 = vcombine.high %v2660_v61, %v2662_v35  ;;  %v3970_v5 = vcombine.high %v2661_v36, %v2663_v62  ;;  %v5509_v61 = vld [vmem:[%s5720_s4 + $0xb8] sm:$0xff] }
0x13c3   : > { %v2045_v15 = vpack.c.bf16 %v2041_v8, %v2041_v8  ;;  %v2047_v16 = vpack.c.bf16 %v2043_v10, %v2043_v10  ;;  %v2656_v6 = vld [vmem:[%s5720_s4 + $0x20] sm:$0xff]  ;;  %v2657_v8 = vld [vmem:[%s5720_s4 + $0x28] sm:$0xff]  ;;  %v5516_v36 = vld [vmem:[%s5720_s4 + $0xf8] sm:$0xff] }
0x13c4   : > { %v2658_v7 = vld [vmem:[%s5720_s4 + $0x60] sm:$0xff]  ;;  %v2659_v10 = vld [vmem:[%s5720_s4 + $0x68] sm:$0xff]  ;;  %v1819_v14 = vpack.c.bf16 %v1815_v2, %v1815_v2 }
0x13c5   : > { %2336 = vmatprep.mubr.bf16.mxu1 %v2045_v15  ;;  %2376 = vmatprep.mubr.bf16.mxu0 %v2047_v16  ;;  %v3964_v13 = vcombine.high %v2656_v6, %v2658_v7  ;;  %v1821_v15 = vpack.c.bf16 %v1817_v3, %v1817_v3  ;;  %v3966_v16 = vcombine.high %v2657_v8, %v2659_v10  ;;  %v4602_v57 = vld [vmem:[%s5721_s5 + $0x200] sm:$0xff]  }
0x13c6   : > { %2337 = vmatmul.mubr.bf16.vlgmr.msra.gmra.mxu1 %v2044_v19  ;;  %2377 = vmatmul.mubr.bf16.vlgmr.msra.gmra.mxu0 %v2046_v20  ;;  %v4572_v19 = vld [vmem:[%s5721_s5 + $0x278] sm:$0xff]   ;;  %v4603_v58 = vld [vmem:[%s5721_s5 + $0x280] sm:$0xff]  }
0x13c7   : > { %4149 = vmatpush3.bf16.msra.mxu1 %v4542_v17  ;;  %4171 = vmatpush3.bf16.msra.mxu0 %v4543_v18  ;;  %v3963_v17 = vcombine.low %v2656_v6, %v2658_v7  ;;  %v3965_v18 = vcombine.low %v2657_v8, %v2659_v10  ;;  %v4573_v20 = vld [vmem:[%s5721_s5 + $0x2f8] sm:$0xff]  }
0x13c8   : > { %2608 = vmatprep.mubr.bf16.mxu1 %v1820_v23  ;;  %2648 = vmatprep.mubr.bf16.mxu0 %v1822_v24  ;;  %v4576_v23 = vld [vmem:[%s5721_s5 + $0x270] sm:$0xff]  }
0x13c9   : > { %4150 = vmatprep.subr.bf16.mxu1 %v4544_v21  ;;  %4172 = vmatprep.subr.bf16.mxu0 %v4545_v22  ;;  %v4574_v21 = vld [vmem:[%s5721_s5 + $0x238] sm:$0xff]   ;;  %v4577_v24 = vld [vmem:[%s5721_s5 + $0x2f0] sm:$0xff]  }
0x13ca   : > { %v4575_v22 = vld [vmem:[%s5721_s5 + $0x2b8] sm:$0xff]  }
0x13cb   : > { %4151 = vmatpush3.bf16.msra.mxu1 %v4546_v25  ;;  %4173 = vmatpush3.bf16.msra.mxu0 %v4547_v26  ;;  %v4578_v25 = vld [vmem:[%s5721_s5 + $0x230] sm:$0xff]  }
0x13cc   : > { %4152 = vmatprep.subr.bf16.mxu1 %v4548_v27  ;;  %4174 = vmatprep.subr.bf16.mxu0 %v4549_v28  ;;  %v4579_v26 = vld [vmem:[%s5721_s5 + $0x2b0] sm:$0xff]   ;;  %v4580_v27 = vld [vmem:[%s5721_s5 + $0x268] sm:$0xff]  }
0x13cd   : > { %v4581_v28 = vld [vmem:[%s5721_s5 + $0x2e8] sm:$0xff]  }
0x13cf   : > { %4153 = vmatpush3.bf16.msra.mxu1 %v4550_v29  ;;  %4175 = vmatpush3.bf16.msra.mxu0 %v4551_v30  ;;  %v4582_v29 = vld [vmem:[%s5721_s5 + $0x228] sm:$0xff]  }
0x13d0   : > { %4154 = vmatprep.subr.bf16.mxu1 %v4552_v31  ;;  %4176 = vmatprep.subr.bf16.mxu0 %v4553_v32  ;;  %v4583_v30 = vld [vmem:[%s5721_s5 + $0x2a8] sm:$0xff]   ;;  %v4584_v31 = vld [vmem:[%s5721_s5 + $0x260] sm:$0xff]  }
0x13d1   : > { %v4585_v32 = vld [vmem:[%s5721_s5 + $0x2e0] sm:$0xff]  }
0x13d3   : > { %4155 = vmatpush3.bf16.msra.mxu1 %v4554_v33  ;;  %4177 = vmatpush3.bf16.msra.mxu0 %v4555_v34  ;;  %v4586_v33 = vld [vmem:[%s5721_s5 + $0x220] sm:$0xff]  }
0x13d4   : > { %4156 = vmatprep.subr.bf16.mxu1 %v4556_v39  ;;  %4178 = vmatprep.subr.bf16.mxu0 %v4557_v41  ;;  %v4587_v34 = vld [vmem:[%s5721_s5 + $0x2a0] sm:$0xff]   ;;  %v4588_v39 = vld [vmem:[%s5721_s5 + $0x258] sm:$0xff]  }
0x13d5   : > { %v4589_v41 = vld [vmem:[%s5721_s5 + $0x2d8] sm:$0xff]  }
0x13d7   : > { %4157 = vmatpush3.bf16.msra.mxu1 %v4558_v42  ;;  %4179 = vmatpush3.bf16.msra.mxu0 %v4559_v45  ;;  %v4590_v42 = vld [vmem:[%s5721_s5 + $0x218] sm:$0xff]  }
0x13d8   : > { %4158 = vmatprep.subr.bf16.mxu1 %v4560_v46  ;;  %4180 = vmatprep.subr.bf16.mxu0 %v4561_v48  ;;  %v4591_v45 = vld [vmem:[%s5721_s5 + $0x298] sm:$0xff]   ;;  %v4592_v46 = vld [vmem:[%s5721_s5 + $0x250] sm:$0xff]  }
0x13d9   : > { %v4593_v48 = vld [vmem:[%s5721_s5 + $0x2d0] sm:$0xff]  }
0x13db   : > { %4159 = vmatpush3.bf16.msra.mxu1 %v4562_v49  ;;  %4181 = vmatpush3.bf16.msra.mxu0 %v4563_v50  ;;  %v4594_v49 = vld [vmem:[%s5721_s5 + $0x210] sm:$0xff]  }
0x13dc   : > { %4160 = vmatprep.subr.bf16.mxu1 %v4564_v53  ;;  %4182 = vmatprep.subr.bf16.mxu0 %v4565_v54  ;;  %v4595_v50 = vld [vmem:[%s5721_s5 + $0x290] sm:$0xff]   ;;  %v4598_v53 = vld [vmem:[%s5721_s5 + $0x208] sm:$0xff]  }
0x13dd   : > { %v4599_v54 = vld [vmem:[%s5721_s5 + $0x288] sm:$0xff]  }
0x13df   : > { %4161 = vmatpush3.bf16.msra.mxu1 %v4566_v55  ;;  %4183 = vmatpush3.bf16.msra.mxu0 %v4567_v47  ;;  %v4600_v55 = vld [vmem:[%s5721_s5 + $0x240] sm:$0xff]  }
0x13e0   : > { %4162 = vmatprep.subr.bf16.mxu1 %v4568_v59  ;;  %4184 = vmatprep.subr.bf16.mxu0 %v4569_v60  ;;  %v4601_v47 = vld [vmem:[%s5721_s5 + $0x2c0] sm:$0xff]   ;;  %v5499_v59 = vld [vmem:[%s5720_s4 + $0xb0] sm:$0xff] }
0x13e1   : > { %v5504_v60 = vld [vmem:[%s5720_s4 + $0xf0] sm:$0xff] }
0x13e2   : > { %v4011_v35 = vcombine.high %v5499_v59, %v5504_v60  ;;  %v4010_v62 = vcombine.low %v5499_v59, %v5504_v60 }
0x13e3   : > { %4163 = vmatpush3.bf16.msra.mxu1 %v4570_v63  ;;  %4185 = vmatpush3.bf16.msra.mxu0 %v4571_v0  ;;  %v4012_v63 = vcombine.low %v5509_v61, %v5516_v36  ;;  %v4013_v0 = vcombine.high %v5509_v61, %v5516_v36 }
0x13e4   : > { %2739 = vmatprep.subr.bf16.mxu1 %v3968_v4  ;;  %2780 = vmatprep.subr.bf16.mxu0 %v3970_v5 }
0x13e6   : > { %2609 = vmatmul.mubr.bf16.vlgmr.msra.gmra.mxu1 %v1819_v14  ;;  %2649 = vmatmul.mubr.bf16.vlgmr.msra.gmra.mxu0 %v1821_v15 }
0x13e7   : > { %2740 = vmatpush1.bf16.msra.mxu1 %v3967_v11  ;;  %2781 = vmatpush1.bf16.msra.mxu0 %v3969_v12 }
0x13e8   : > { %2741 = vmatprep.subr.bf16.mxu1 %v3964_v13  ;;  %2782 = vmatprep.subr.bf16.mxu0 %v3966_v16 }
0x13e9   : > { %2759 = vmatprep.mubr.bf16.mxu1 %v4760_v38  ;;  %2800 = vmatprep.mubr.bf16.mxu0 %v4760_v38 }
0x13eb   : > { %2742 = vmatpush1.bf16.msra.mxu1 %v3963_v17  ;;  %2783 = vmatpush1.bf16.msra.mxu0 %v3965_v18  ;;  %v3962_v18 = vld [vmem:[%s5722_s6 + $0x44] ss:$8 sm:$0xf] }
0x13ec   : > { %4192 = vmatprep.subr.bf16.mxu1 %v4572_v19  ;;  %4214 = vmatprep.subr.bf16.mxu0 %v4573_v20 }
0x13ee   : > { %3971 = vmatmul.mubr.msk.bf16.vlgmr.msra.gmra.mxu1 %vm315_vm1, %v5132_v9  ;;  %3972 = vmatmul.mubr.msk.bf16.vlgmr.msra.gmra.mxu0 %vm315_vm1, %v5132_v9 }
0x13ef   : > { %4193 = vmatpush3.bf16.msra.mxu1 %v4574_v21  ;;  %4215 = vmatpush3.bf16.msra.mxu0 %v4575_v22 }
0x13f0   : > { %4194 = vmatprep.subr.bf16.mxu1 %v4576_v23  ;;  %4216 = vmatprep.subr.bf16.mxu0 %v4577_v24  ;;  %v2670_v24 = vrot.slane %v3962_v18, %v5257_v43 }
0x13f3   : > { %4195 = vmatpush3.bf16.msra.mxu1 %v4578_v25  ;;  %4217 = vmatpush3.bf16.msra.mxu0 %v4579_v26  ;;  %v2678_v25 = vrot.slane %v3962_v18, %v5259_v44 }
0x13f4   : > { %4196 = vmatprep.subr.bf16.mxu1 %v4580_v27  ;;  %4218 = vmatprep.subr.bf16.mxu0 %v4581_v28 }
0x13f7   : > { %4197 = vmatpush3.bf16.msra.mxu1 %v4582_v29  ;;  %4219 = vmatpush3.bf16.msra.mxu0 %v4583_v30  ;;  %v2674_v29 = vrot.slane %v3962_v18, %v5250_v37  ;;  %v2682_v30 = vrot.slane %v3962_v18, %v5252_v40  ;;  %v4621_v18 = vld [vmem:[%s5721_s5 + $0x3d8] sm:$0xff]  }
0x13f8   : > { %4198 = vmatprep.subr.bf16.mxu1 %v4584_v31  ;;  %4220 = vmatprep.subr.bf16.mxu0 %v4585_v32 }
0x13fb   : > { %4199 = vmatpush3.bf16.msra.mxu1 %v4586_v33  ;;  %4221 = vmatpush3.bf16.msra.mxu0 %v4587_v34 }
0x13fc   : > { %4200 = vmatprep.subr.bf16.mxu1 %v4588_v39  ;;  %4222 = vmatprep.subr.bf16.mxu0 %v4589_v41 }
0x13ff   : > { %4201 = vmatpush3.bf16.msra.mxu1 %v4590_v42  ;;  %4223 = vmatpush3.bf16.msra.mxu0 %v4591_v45 }
0x1400   : > { %4202 = vmatprep.subr.bf16.mxu1 %v4592_v46  ;;  %4224 = vmatprep.subr.bf16.mxu0 %v4593_v48 }
0x1403   : > { %4203 = vmatpush3.bf16.msra.mxu1 %v4594_v49  ;;  %4225 = vmatpush3.bf16.msra.mxu0 %v4595_v50 }
0x1404   : > { %4204 = vmatprep.subr.bf16.mxu1 %v4596_v51  ;;  %4226 = vmatprep.subr.bf16.mxu0 %v4597_v52  ;;  %v3154_v51 = vld [vmem:[%s5720_s4 + $0x30] sm:$0xff] }
0x1407   : > { %4205 = vmatpush3.bf16.msra.mxu1 %v4598_v53  ;;  %4227 = vmatpush3.bf16.msra.mxu0 %v4599_v54  ;;  %v3156_v54 = vld [vmem:[%s5720_s4 + $0x70] sm:$0xff] }
0x1408   : > { %4206 = vmatprep.subr.bf16.mxu1 %v4600_v55  ;;  %4228 = vmatprep.subr.bf16.mxu0 %v4601_v47  ;;  %v3155_v55 = vld [vmem:[%s5720_s4 + $0x38] sm:$0xff]  ;;  %v4007_v36 = vcombine.high %v3154_v51, %v3156_v54 }
0x1409   : > { %v3157_v47 = vld [vmem:[%s5720_s4 + $0x78] sm:$0xff] }
0x140b   : > { %4207 = vmatpush3.bf16.msra.mxu1 %v4602_v57  ;;  %4229 = vmatpush3.bf16.msra.mxu0 %v4603_v58 }
0x140c   : > { %3237 = vmatprep.subr.bf16.mxu1 %v4011_v35  ;;  %3278 = vmatprep.subr.bf16.mxu0 %v4013_v0  ;;  %v4009_v0 = vcombine.high %v3155_v55, %v3157_v47 }
0x1486   : > { %v4120_v2 = vpop.f32.mrf.mxu1  ;;  %v4142_v3 = vpop.f32.mrf.mxu0 }
0x1488   : > { %v4121_v4 = vpop.f32.mrf.mxu1  ;;  %v4143_v5 = vpop.f32.mrf.mxu0 }
0x1489   : > { %v4122_v6 = vadd.f32 %v4121_v4, %v4120_v2  ;;  %v4144_v7 = vadd.f32 %v4143_v5, %v4142_v3  ;;  %v4006_v2 = vcombine.low %v3154_v51, %v3156_v54  ;;  %v4008_v3 = vcombine.low %v3155_v55, %v3157_v47  ;;  %v4604_v4 = vld [vmem:[%s5721_s5 + $0x378] sm:$0xff]  }
0x148a   : > { %v4123_v8 = vpop.f32.mrf.mxu1  ;;  %v4145_v10 = vpop.f32.mrf.mxu0  ;;  %v4605_v5 = vld [vmem:[%s5721_s5 + $0x3f8] sm:$0xff]  }
0x148b   : > { %v2379_v11 = vadd.f32 %v4144_v7, %v4122_v6  ;;  %v4608_v6 = vld [vmem:[%s5721_s5 + $0x370] sm:$0xff]   ;;  %v4612_v10 = vld [vmem:[%s5721_s5 + $0x368] sm:$0xff]  }
0x148c   : > { %v4124_v12 = vpop.f32.mrf.mxu1  ;;  %v4146_v13 = vpop.f32.mrf.mxu0  ;;  %v4610_v7 = vld [vmem:[%s5721_s5 + $0x330] sm:$0xff]  }
0x148d   : > { %v4611_v8 = vld [vmem:[%s5721_s5 + $0x3b0] sm:$0xff]   ;;  %v4615_v12 = vld [vmem:[%s5721_s5 + $0x3a8] sm:$0xff]   ;;  %v4616_v13 = vld [vmem:[%s5721_s5 + $0x360] sm:$0xff]  }
0x14a6   : > { %v4164_v14 = vpop.f32.mrf.mxu1  ;;  %v4186_v15 = vpop.f32.mrf.mxu0 }
0x14a8   : > { %v4165_v16 = vpop.f32.mrf.mxu1  ;;  %v4187_v17 = vpop.f32.mrf.mxu0 }
0x14a9   : > { %v4166_v19 = vadd.f32 %v4165_v16, %v4164_v14  ;;  %v4188_v20 = vadd.f32 %v4187_v17, %v4186_v15  ;;  %v4617_v14 = vld [vmem:[%s5721_s5 + $0x3e0] sm:$0xff]   ;;  %v4620_v17 = vld [vmem:[%s5721_s5 + $0x358] sm:$0xff]  }
0x14aa   : > { %v4167_v21 = vpop.f32.mrf.mxu1  ;;  %v4189_v22 = vpop.f32.mrf.mxu0  ;;  %v4618_v15 = vld [vmem:[%s5721_s5 + $0x320] sm:$0xff]  }
0x14ab   : > { %v2611_v23 = vadd.f32 %v4166_v19, %v2379_v11  ;;  %v4614_v11 = vld [vmem:[%s5721_s5 + $0x328] sm:$0xff]   ;;  %v4619_v16 = vld [vmem:[%s5721_s5 + $0x3a0] sm:$0xff]   ;;  %v4622_v19 = vld [vmem:[%s5721_s5 + $0x318] sm:$0xff]  }
0x14ac   : > { %v4168_v26 = vpop.f32.mrf.mxu1  ;;  %v4190_v27 = vpop.f32.mrf.mxu0  ;;  %v4624_v21 = vld [vmem:[%s5721_s5 + $0x350] sm:$0xff]  }
0x14ad   : > { %v5529_v28 = vadd.f32 %v4188_v20, %v2611_v23  ;;  %v4623_v20 = vld [vmem:[%s5721_s5 + $0x398] sm:$0xff]   ;;  %v4625_v22 = vld [vmem:[%s5721_s5 + $0x3d0] sm:$0xff]   ;;  %v4629_v26 = vld [vmem:[%s5721_s5 + $0x3c8] sm:$0xff]  }
0x14ae   : > { %v2761_v31 = vpop.f32.mrf.mxu1  ;;  %v2802_v32 = vpop.f32.mrf.mxu0  ;;  %v4626_v23 = vld [vmem:[%s5721_s5 + $0x310] sm:$0xff]   ;;  %v4630_v27 = vld [vmem:[%s5721_s5 + $0x308] sm:$0xff]  }
0x14af   : > { %v2762_v33 = vadd.f32 %v2761_v31, %v2670_v24  ;;  %v2803_v34 = vadd.f32 %v2802_v32, %v2678_v25  ;;  %v4627_v24 = vld [vmem:[%s5721_s5 + $0x390] sm:$0xff]   ;;  %v4628_v25 = vld [vmem:[%s5721_s5 + $0x348] sm:$0xff]   ;;  %v4633_v31 = vld [vmem:[%s5721_s5 + $0x3c0] sm:$0xff]  }
0x14b0   : > { %v2763_v39 = vpop.f32.mrf.mxu1  ;;  %v2804_v41 = vpop.f32.mrf.mxu0  ;;  %v4634_v32 = vld [vmem:[%s5721_s5 + $0x300] sm:$0xff]  }
0x14b1   : > { %v2764_v42 = vadd.f32 %v2763_v39, %v2674_v29  ;;  %v2805_v45 = vadd.f32 %v2804_v41, %v2682_v30  ;;  %v2809_v46 = vmax.f32 %v2762_v33, 0.0  ;;  %v2811_v48 = vmax.f32 %v2803_v34, 0.0  ;;  %v4631_v29 = vld [vmem:[%s5721_s5 + $0x388] sm:$0xff]   ;;  %v4632_v30 = vld [vmem:[%s5721_s5 + $0x340] sm:$0xff]  }
0x14b2   : > { %v2765_v49 = vpop.f32.mrf.mxu1  ;;  %v2806_v50 = vpop.f32.mrf.mxu0  ;;  %v4635_v33 = vld [vmem:[%s5721_s5 + $0x380] sm:$0xff]  }
0x14b3   : > { %v2810_v52 = vmax.f32 %v2764_v42, 0.0  ;;  %v2812_v53 = vmax.f32 %v2805_v45, 0.0  ;;  %v2813_v61 = vpack.c.bf16 %v2809_v46, %v2809_v46  ;;  %v2815_v35 = vpack.c.bf16 %v2811_v48, %v2811_v48  ;;  %v4005_v45 = vld [vmem:[%s5722_s6 + $0x64] ss:$8 sm:$0xf] }
0x14b4   : > { %v2766_v57 = vpop.f32.mrf.mxu1  ;;  %v2807_v58 = vpop.f32.mrf.mxu0 }
0x14b5   : > { %v2814_v59 = vpack.c.bf16 %v2810_v52, %v2810_v52  ;;  %v2816_v60 = vpack.c.bf16 %v2812_v53, %v2812_v53  ;;  %v3168_v52 = vrot.slane %v4005_v45, %v5257_v43  ;;  %v3176_v53 = vrot.slane %v4005_v45, %v5259_v44 }
0x14b6   : > { %v3172_v57 = vrot.slane %v4005_v45, %v5250_v37  ;;  %v3180_v58 = vrot.slane %v4005_v45, %v5252_v40 }
0x14b7   : > { %3105 = vmatprep.mubr.bf16.mxu1 %v2814_v59  ;;  %3145 = vmatprep.mubr.bf16.mxu0 %v2816_v60 }
0x14b8   : > { %3106 = vmatmul.mubr.bf16.vlgmr.msra.gmra.mxu1 %v2813_v61  ;;  %3146 = vmatmul.mubr.bf16.vlgmr.msra.gmra.mxu0 %v2815_v35 }
0x14b9   : > { %3238 = vmatpush1.bf16.msra.mxu1 %v4010_v62  ;;  %3279 = vmatpush1.bf16.msra.mxu0 %v4012_v63  ;;  %v4606_v62 = vld [vmem:[%s5721_s5 + $0x338] sm:$0xff]  }
0x14ba   : > { %3239 = vmatprep.subr.bf16.mxu1 %v4007_v36  ;;  %3280 = vmatprep.subr.bf16.mxu0 %v4009_v0  ;;  %v4607_v63 = vld [vmem:[%s5721_s5 + $0x3b8] sm:$0xff]  }
0x14bb   : > { %3257 = vmatprep.mubr.bf16.mxu1 %v4760_v38  ;;  %3298 = vmatprep.mubr.bf16.mxu0 %v4760_v38  ;;  %v4609_v38 = vld [vmem:[%s5721_s5 + $0x3f0] sm:$0xff]  }
0x14bd   : > { %3240 = vmatpush1.bf16.msra.mxu1 %v4006_v2  ;;  %3281 = vmatpush1.bf16.msra.mxu0 %v4008_v3 }
0x14be   : > { %4236 = vmatprep.subr.bf16.mxu1 %v4604_v4  ;;  %4258 = vmatprep.subr.bf16.mxu0 %v4605_v5 }
0x14c0   : > { %4014 = vmatmul.mubr.msk.bf16.vlgmr.msra.gmra.mxu1 %vm315_vm1, %v5132_v9  ;;  %4015 = vmatmul.mubr.msk.bf16.vlgmr.msra.gmra.mxu0 %vm315_vm1, %v5132_v9  ;;  %v4613_v9 = vld [vmem:[%s5721_s5 + $0x3e8] sm:$0xff]  }
0x14c1   : > { %4237 = vmatpush3.bf16.msra.mxu1 %v4606_v62  ;;  %4259 = vmatpush3.bf16.msra.mxu0 %v4607_v63 }
0x14c2   : > { %4238 = vmatprep.subr.bf16.mxu1 %v4608_v6  ;;  %4260 = vmatprep.subr.bf16.mxu0 %v4609_v38 }
0x14c5   : > { %4239 = vmatpush3.bf16.msra.mxu1 %v4610_v7  ;;  %4261 = vmatpush3.bf16.msra.mxu0 %v4611_v8 }
0x14c6   : > { %4240 = vmatprep.subr.bf16.mxu1 %v4612_v10  ;;  %4262 = vmatprep.subr.bf16.mxu0 %v4613_v9 }
0x14c9   : > { %4241 = vmatpush3.bf16.msra.mxu1 %v4614_v11  ;;  %4263 = vmatpush3.bf16.msra.mxu0 %v4615_v12 }
0x14ca   : > { %4242 = vmatprep.subr.bf16.mxu1 %v4616_v13  ;;  %4264 = vmatprep.subr.bf16.mxu0 %v4617_v14 }
0x14cd   : > { %4243 = vmatpush3.bf16.msra.mxu1 %v4618_v15  ;;  %4265 = vmatpush3.bf16.msra.mxu0 %v4619_v16 }
0x14ce   : > { %4244 = vmatprep.subr.bf16.mxu1 %v4620_v17  ;;  %4266 = vmatprep.subr.bf16.mxu0 %v4621_v18 }
0x14d1   : > { %4245 = vmatpush3.bf16.msra.mxu1 %v4622_v19  ;;  %4267 = vmatpush3.bf16.msra.mxu0 %v4623_v20  ;;  %v293_v19 = vld [vmem:[%s5722_s6 + $0x5] ss:$0 sm:$0xff] }
0x14d2   : > { %4246 = vmatprep.subr.bf16.mxu1 %v4624_v21  ;;  %4268 = vmatprep.subr.bf16.mxu0 %v4625_v22 }
0x14d5   : > { %4247 = vmatpush3.bf16.msra.mxu1 %v4626_v23  ;;  %4269 = vmatpush3.bf16.msra.mxu0 %v4627_v24 }
0x14d6   : > { %4248 = vmatprep.subr.bf16.mxu1 %v4628_v25  ;;  %4270 = vmatprep.subr.bf16.mxu0 %v4629_v26 }
0x14d9   : > { %4249 = vmatpush3.bf16.msra.mxu1 %v4630_v27  ;;  %4271 = vmatpush3.bf16.msra.mxu0 %v4631_v29  ;;  %v297_v29 = vld [vmem:[%s5722_s6 + $0x81] ss:$0 sm:$0xff] }
0x14da   : > { %4250 = vmatprep.subr.bf16.mxu1 %v4632_v30  ;;  %4272 = vmatprep.subr.bf16.mxu0 %v4633_v31 }
0x14dd   : > { %4251 = vmatpush3.bf16.msra.mxu1 %v4634_v32  ;;  %4273 = vmatpush3.bf16.msra.mxu0 %v4635_v33  ;;  %v294_v33 = vld [vmem:[%s5722_s6 + $0x6] ss:$0 sm:$0xff] }
0x14de   : > { %4434 = vmatprep.subr.mxu1 %v4735_v1 }
0x1578   : > { %v4208_v34 = vpop.f32.mrf.mxu1  ;;  %v4230_v39 = vpop.f32.mrf.mxu0 }
0x157a   : > { %v4209_v41 = vpop.f32.mrf.mxu1  ;;  %v4231_v42 = vpop.f32.mrf.mxu0 }
0x157b   : > { %v4210_v46 = vadd.f32 %v4209_v41, %v4208_v34  ;;  %v4232_v48 = vadd.f32 %v4231_v42, %v4230_v39  ;;  %v295_v39 = vld [vmem:[%s5722_s6 + $0x7] ss:$0 sm:$0xff] }
0x157c   : > { %v4211_v49 = vpop.f32.mrf.mxu1  ;;  %v4233_v50 = vpop.f32.mrf.mxu0 }
0x157d   : > { %v3148_v51 = vadd.f32 %v4232_v48, %v4210_v46  ;;  %v296_v48 = vld [vmem:[%s5722_s6 + $0x80] ss:$0 sm:$0xff] }
0x157e   : > { %v4212_v54 = vpop.f32.mrf.mxu1  ;;  %v4234_v55 = vpop.f32.mrf.mxu0  ;;  %v3753_v49 = vld [vmem:[%s286_s22] sm:$0x1] }
0x157f   : > { %v3153_v47 = vadd.f32 %v3148_v51, %v5529_v28  ;;  %v3754_v51 = vsub.f32 1.0, %v3753_v49 }
0x1580   : > { %v3259_v59 = vpop.f32.mrf.mxu1  ;;  %v3300_v60 = vpop.f32.mrf.mxu0 }
0x1581   : > { %v3260_v61 = vadd.f32 %v3259_v59, %v3168_v52  ;;  %v3301_v35 = vadd.f32 %v3300_v60, %v3176_v53  ;;  %v3756_v53 = vmul.f32 1e+30, %v3753_v49 }
0x1582   : > { %v3261_v36 = vpop.f32.mrf.mxu1  ;;  %v3302_v0 = vpop.f32.mrf.mxu0 }
0x1583   : > { %v3262_v2 = vadd.f32 %v3261_v36, %v3172_v57  ;;  %v3303_v3 = vadd.f32 %v3302_v0, %v3180_v58  ;;  %v3307_v4 = vmax.f32 %v3260_v61, 0.0  ;;  %v3309_v43 = vmax.f32 %v3301_v35, 0.0 }
0x1584   : > { %v3263_v5 = vpop.f32.mrf.mxu1  ;;  %v3304_v44 = vpop.f32.mrf.mxu0 }
0x1585   : > { %v3308_v62 = vmax.f32 %v3262_v2, 0.0  ;;  %v3310_v63 = vmax.f32 %v3303_v3, 0.0  ;;  %v3311_v7 = vpack.c.bf16 %v3307_v4, %v3307_v4  ;;  %v3313_v40 = vpack.c.bf16 %v3309_v43, %v3309_v43 }
0x1586   : > { %v3264_v6 = vpop.f32.mrf.mxu1  ;;  %v3305_v28 = vpop.f32.mrf.mxu0 }
0x1587   : > { %v3312_v38 = vpack.c.bf16 %v3308_v62, %v3308_v62  ;;  %v3314_v37 = vpack.c.bf16 %v3310_v63, %v3310_v63 }
0x1589   : > { %3603 = vmatprep.mubr.bf16.mxu1 %v3312_v38  ;;  %3643 = vmatprep.mubr.bf16.mxu0 %v3314_v37 }
0x158a   : > { %3604 = vmatmul.mubr.bf16.vlgmr.msra.gmra.mxu1 %v3311_v7  ;;  %3644 = vmatmul.mubr.bf16.vlgmr.msra.gmra.mxu0 %v3313_v40 }
0x158b   : > { %4436 = vmatprep.mubr.msk.f32.mxu1 %vm4736_vm0, %v4735_v1 }
0x164a   : > { %v4252_v8 = vpop.f32.mrf.mxu1  ;;  %v4274_v10 = vpop.f32.mrf.mxu0 }
0x164c   : > { %v4253_v9 = vpop.f32.mrf.mxu1  ;;  %v4275_v11 = vpop.f32.mrf.mxu0 }
0x164d   : > { %v4254_v12 = vadd.f32 %v4253_v9, %v4252_v8  ;;  %v4276_v13 = vadd.f32 %v4275_v11, %v4274_v10 }
0x164e   : > { %v4255_v14 = vpop.f32.mrf.mxu1  ;;  %v4277_v15 = vpop.f32.mrf.mxu0 }
0x164f   : > { %v3646_v16 = vadd.f32 %v4276_v13, %v4254_v12 }
0x1650   : > { %v4256_v17 = vpop.f32.mrf.mxu1  ;;  %v4278_v18 = vpop.f32.mrf.mxu0 }
0x1651   : > { %v3651_v20 = vadd.f32 %v3646_v16, %v3153_v47 }
0x1653   : > { %v3652_v21 = vadd.f32 %v3651_v20, %v293_v19 }
0x1655   : > { %v3653_v22 = vadd.f32 %v3652_v21, %v5128_v56 }
0x1657   : > { %v3654_v1 = vsel %vm315_vm1, %v3653_v22, 0.0 }
0x1658   : > { %3655 = vadd.xlane.f32.xlu1 %v3654_v1 }
0x16e1   : > { %v3656_v23 = vpop.xlane.xlu1 %3655 }
0x16e2   : > { %v3657_v24 = vmul.f32 0.03125, %v3656_v23 }
0x16e4   : > { %v3658_v25 = vsub.f32 %v3653_v22, %v3657_v24 }
0x16e6   : > { %v3659_v26 = vmul.f32 %v3658_v25, %v3658_v25 }
0x16e8   : > { %v3660_v27 = vsel %vm315_vm1, %v3659_v26, 0.0 }
0x16e9   : > { %3661 = vadd.xlane.f32.xlu1 %v3660_v27 }
0x16fa   : > { %3674 = vperm.xlu1 %4504, %v297_v29  }
0x1772   : > { %v3662_v30 = vpop.xlane.xlu1 %3661 }
0x1773   : > { %v3663_v31 = vmul.f32 0.03125, %v3662_v30 }
0x1775   : > { %v3664_v32 = vadd.f32 1e-05, %v3663_v31 }
0x1776   : > { %v3675_v50 = vpop.permute.xlu1 %3674 }
0x1777   : > { %4670 = vrsqrt.f32 %v3664_v32 }
0x1784   : > { %v4671_v56 = vpop.eup %4670 }
0x1785   : > { %v3666_v34 = vmul.f32 %v4671_v56, %v3658_v25 }
0x1787   : > { %v3667_v41 = vmul.f32 %v3666_v34, %v294_v33 }
0x1789   : > { %v3668_v42 = vadd.f32 %v3667_v41, %v295_v39 }
0x178b   : > { %vm3669_vm6 = vcmp.ge.f32.partialorder %v3668_v42, 0.0  ;;  %v3670_v45 = vmul.f32 0.01, %v3668_v42 }
0x178d   : > { %v3671_v46 = vsel %vm3669_vm6, %v3668_v42, %v3670_v45 }
0x178e   : > { %4435 = vmatpush3.xpose.msk.msra.mxu1 %vm315_vm1, %v3671_v46 }
0x1791   : > { %4437 = vmatmul.mubr.msk.f32.vlgmr.msra.gmra.mxu1 %vm315_vm1, %v296_v48 }
0x1851   : > { %v3749_v52 = vpop.f32.mrf.mxu1 }
0x1852   : > { %v3750_v54 = vadd.f32 %v3749_v52, %v3675_v50 }
0x1853   : > { %v4438_v55 = vpop.f32.mrf.mxu1 }
0x1854   : > { %v3755_v47 = vmul.f32 %v3754_v51, %v3750_v54 }
0x1856   : > { %v3757_v57 = vsub.f32 %v3755_v47, %v3756_v53 }
0x1858   : > { %3759 = vst.msk [vmem:[%s279_s8] sm:$0x1] %vm3758_vm7, %v3757_v57 }
0x1859   : > { %4686 = shalt.err (!%p4683_p3)
}
0x185a   : > { %s4687_s21 = scalar_lea.hbm %s3771_s15, 16  ;;  %s4691_s23 = scalar_lea.hbm %s5723_s7, 32 }
0x185b   : > { %p4688_p4 = scmp.ne.s32.totalorder %s3771_s15, %s4687_s21  ;;  %p4692_p9 = scmp.lt.s32.totalorder %s3771_s15, %s5723_s7 }
0x185c   : > { %p4693_p10 = scmp.lt.s32.totalorder %s4691_s23, %s4687_s21 }
0x185d   : > { %p4689_p7 = pnand %p4688_p4, %p4840_p5 }
0x185e   : > { %p4694_p11 = por %p4693_p10, %p4692_p9 }
0x185f   : > { %p4690_p8 = pneg %p4689_p7 }
0x1861   : > { %p4695_p12 = pnand %p4694_p11, %p4690_p8 }
0x1863   : > { %4698 = shalt.err (!%p4695_p12)
}
0x1864   : > { %4439 = dma.vmem_to_hbm [thread:$0]  (%p4840_p5), %s3774_s9, 16, %s3771_s15, %s3761_s17  }
0x1865 PF: > { %p4445_p13 = scmp.ge.s32.totalorder %s4733_s27, 2  ;;  %s3785_s13 = sand.u32 1, %s4721_s24  }
0x1866   : > { %s3786_s14 = scalar_lea.sflag [#allocation3], %s3785_s13 }
0x1867   : > { %p4442_p0 = pnand %p4445_p13, %p4844_p6 }
0x1869   : > { %p4443_p1 = pneg %p4442_p0 }
0x186b   : > { %4716 = dma.done.wait (%p4443_p1), %s3786_s14, 16  }
0x186c   : > { %4718 = vsyncadd (%p4443_p1), %s3786_s14, 4294967280  ;;  %p17_p2 = scmp.ge.s32.totalorder %s4827_s30, 4   ;;  %s5726_s24 = smov %s4725_s25 }
0x186d   : > { %s5727_s25 = smov %s4729_s26  ;;  %s5728_s26 = smov %s4838_s10 }
0x186e   : > { %s5729_s27 = smov %s4827_s30  ;;  %19 = sbr.rel (!%p17_p2) target bundleno = 3 (0x3), region = 97 }
0x1873   :  { %3790 = vsyncpa [#allocation3], 1 }
0x1874   :  { %3792 = vsyncpa [#allocation3 + $0x1], 1 }

</bundles_post_ra>
